<compile_context>
chip_gen: v6e
topology: v6e:2x2x1
jax: 0.10.0
libtpu: 0.0.40
codegen_flags: <defaults>
</compile_context>

<pallas_src>
import jax
import jax.numpy as jnp
from jax.experimental import pallas as pl
from jax.experimental.pallas import tpu as pltpu

IN_DIM = 1536
HID_DIM = 512
OUT_DIM = 1
OUT_PAD = 128   # lane-dense output width (zero-padded second-layer columns)


def _round_up(x, m):
    return pl.cdiv(x, m) * m


def mlp_kernel(x_ref, w1_ref, b1_ref, w2_ref, b2_ref, o_ref):
    # x_ref:  (tb, 1536)   bf16 batch tile
    # w1_ref: (1536, 512)  bf16, input-major (grid-invariant)
    # b1_ref: (1, 512)     f32
    # w2_ref: (512, 128)   f32, columns 1..127 are zero padding
    # b2_ref: (1, 128)     f32, columns 1..127 are zero padding
    # o_ref:  (tb, 128)    f32, only column 0 is meaningful
    h = jnp.dot(x_ref[...], w1_ref[...], preferred_element_type=jnp.float32)
    h = jnp.maximum(h + b1_ref[...], 0.0)          # Linear(1536->512) + ReLU
    # Dropout(0.5) -> identity in eval mode.
    out = jnp.dot(h, w2_ref[...], preferred_element_type=jnp.float32)
    o_ref[...] = (out + b2_ref[...]).astype(o_ref.dtype)


def hoptimus_binary_classifier(x, w1, b1, w2, b2, *, tb=256,
                               compute_dtype=jnp.bfloat16):
    """x: (B, 1536).  Weights PyTorch-style: w1 (512,1536), b1 (512,),
    w2 (1,512), b2 (1,).  Returns (B, 1) float32 logits."""
    B, D = x.shape
    assert D == IN_DIM

    # Pick a tile that is a multiple of 8 and no bigger than needed.
    tb = int(min(tb, _round_up(B, 8)))
    B_pad = int(_round_up(B, tb))
    if B_pad != B:
        x = jnp.pad(x, ((0, B_pad - B), (0, 0)))

    # bf16 inputs for the MXU-heavy first layer; f32 accumulation in-kernel.
    x_c = x.astype(compute_dtype)
    w1_t = w1.T.astype(compute_dtype)                       # (1536, 512)
    b1_r = b1.reshape(1, HID_DIM).astype(jnp.float32)       # (1, 512)

    # Zero-pad the second layer to 128 output lanes for lane-dense stores.
    w2_pad = jnp.zeros((HID_DIM, OUT_PAD), jnp.float32)
    w2_pad = w2_pad.at[:, :OUT_DIM].set(w2.T.astype(jnp.float32))
    b2_pad = jnp.zeros((1, OUT_PAD), jnp.float32)
    b2_pad = b2_pad.at[:, :OUT_DIM].set(b2.reshape(1, OUT_DIM).astype(jnp.float32))

    grid = (B_pad // tb,)
    out_pad = pl.pallas_call(
        mlp_kernel,
        out_shape=jax.ShapeDtypeStruct((B_pad, OUT_PAD), jnp.float32),
        grid_spec=pltpu.PrefetchScalarGridSpec(
            num_scalar_prefetch=0,
            grid=grid,
            in_specs=[
                pl.BlockSpec((tb, IN_DIM), lambda i: (i, 0)),         # x tile
                pl.BlockSpec((IN_DIM, HID_DIM), lambda i: (0, 0)),    # w1^T (resident)
                pl.BlockSpec((1, HID_DIM), lambda i: (0, 0)),         # b1
                pl.BlockSpec((HID_DIM, OUT_PAD), lambda i: (0, 0)),   # w2^T padded
                pl.BlockSpec((1, OUT_PAD), lambda i: (0, 0)),         # b2 padded
            ],
            out_specs=pl.BlockSpec((tb, OUT_PAD), lambda i: (i, 0)),
        ),
        compiler_params=pltpu.CompilerParams(
            dimension_semantics=("parallel",),   # megacore shards batch tiles on v7x
        ),
    )(x_c, w1_t, b1_r, w2_pad, b2_pad)

    return out_pad[:B, :OUT_DIM]


def reference(x, w1, b1, w2, b2):
    h = jnp.maximum(x @ w1.T + b1, 0.0)
    return h @ w2.T + b2


if __name__ == "__main__":
    key = jax.random.PRNGKey(0)
    k_x, k_w1, k_b1, k_w2, k_b2 = jax.random.split(key, 5)

    B = 8  # small test batch; feature dims fixed by the module (1536 -> 512 -> 1)
    x = jax.random.normal(k_x, (B, IN_DIM), dtype=jnp.float32)

    # Deterministic synthetic parameters (PyTorch-default-like uniform ranges).
    bound1 = 1.0 / (IN_DIM ** 0.5)
    bound2 = 1.0 / (HID_DIM ** 0.5)
    w1 = jax.random.uniform(k_w1, (HID_DIM, IN_DIM), jnp.float32, -bound1, bound1)
    b1 = jax.random.uniform(k_b1, (HID_DIM,), jnp.float32, -bound1, bound1)
    w2 = jax.random.uniform(k_w2, (OUT_DIM, HID_DIM), jnp.float32, -bound2, bound2)
    b2 = jax.random.uniform(k_b2, (OUT_DIM,), jnp.float32, -bound2, bound2)

    out = hoptimus_binary_classifier(x, w1, b1, w2, b2)
    out = jax.block_until_ready(out)

    ref = reference(x, w1, b1, w2, b2)
    assert out.shape == (B, OUT_DIM)
    # bf16 first-layer inputs (f32 accumulation) -> tolerance loosened vs pure f32.
    assert jnp.allclose(out, ref, atol=5e-2, rtol=5e-2), "mismatch vs reference"

    print("KERNEL_OK")
</pallas_src>

<mosaic_0001>
module attributes {stable_mosaic.version = 11 : i64} {
  func.func @mlp_kernel(%arg0: i32, %arg1: memref<8x1536xbf16, #tpu.memory_space<vmem>>, %arg2: memref<1536x512xbf16, #tpu.memory_space<vmem>>, %arg3: memref<1x512xf32, #tpu.memory_space<vmem>>, %arg4: memref<512x128xf32, #tpu.memory_space<vmem>>, %arg5: memref<1x128xf32, #tpu.memory_space<vmem>>, %arg6: memref<8x128xf32, #tpu.memory_space<vmem>>) attributes {dimension_semantics = [#tpu.dimension_semantics<parallel>], iteration_bounds = array<i64: 1>, scalar_prefetch = 0 : i64, scratch_operands = 0 : i64, tpu.core_type = #tpu.core_type<tc>, window_params = [{transform_indices = @transform_0, window_bounds = array<i64: 8, 1536>}, {pipeline_mode = #tpu.pipeline_mode<synchronous>, transform_indices = @transform_1, window_bounds = array<i64: 1536, 512>}, {pipeline_mode = #tpu.pipeline_mode<synchronous>, transform_indices = @transform_2, window_bounds = array<i64: 1, 512>}, {pipeline_mode = #tpu.pipeline_mode<synchronous>, transform_indices = @transform_3, window_bounds = array<i64: 512, 128>}, {pipeline_mode = #tpu.pipeline_mode<synchronous>, transform_indices = @transform_4, window_bounds = array<i64: 1, 128>}, {transform_indices = @transform_5, window_bounds = array<i64: 8, 128>}]} {
    %c0 = arith.constant 0 : index
    %c0_0 = arith.constant 0 : index
    %0 = vector.load %arg1[%c0, %c0_0] : memref<8x1536xbf16, #tpu.memory_space<vmem>>, vector<8x1536xbf16>
    %c0_1 = arith.constant 0 : index
    %c0_2 = arith.constant 0 : index
    %1 = vector.load %arg2[%c0_1, %c0_2] : memref<1536x512xbf16, #tpu.memory_space<vmem>>, vector<1536x512xbf16>
    %cst = arith.constant dense<0.000000e+00> : vector<8x512xf32>
    %2 = tpu.matmul %0, %1, %cst {dimension_numbers = #tpu.dot_dimension_numbers<[1], [0], [0], [1], [0, 0, 1, 1], [], []>} : vector<8x1536xbf16>, vector<1536x512xbf16>, vector<8x512xf32> -> vector<8x512xf32>
    %c0_3 = arith.constant 0 : index
    %c0_4 = arith.constant 0 : index
    %3 = vector.load %arg3[%c0_3, %c0_4] : memref<1x512xf32, #tpu.memory_space<vmem>>, vector<1x512xf32>
    %4 = vector.broadcast %3 : vector<1x512xf32> to vector<8x512xf32>
    %5 = arith.addf %2, %4 : vector<8x512xf32>
    %cst_5 = arith.constant 0.000000e+00 : f32
    %6 = vector.broadcast %cst_5 : f32 to vector<8x512xf32>
    %7 = arith.maximumf %5, %6 : vector<8x512xf32>
    %c0_6 = arith.constant 0 : index
    %c0_7 = arith.constant 0 : index
    %8 = vector.load %arg4[%c0_6, %c0_7] : memref<512x128xf32, #tpu.memory_space<vmem>>, vector<512x128xf32>
    %cst_8 = arith.constant dense<0.000000e+00> : vector<8x128xf32>
    %9 = tpu.matmul %7, %8, %cst_8 {dimension_numbers = #tpu.dot_dimension_numbers<[1], [0], [0], [1], [0, 0, 1, 1], [], []>} : vector<8x512xf32>, vector<512x128xf32>, vector<8x128xf32> -> vector<8x128xf32>
    %c0_9 = arith.constant 0 : index
    %c0_10 = arith.constant 0 : index
    %10 = vector.load %arg5[%c0_9, %c0_10] : memref<1x128xf32, #tpu.memory_space<vmem>>, vector<1x128xf32>
    %11 = vector.broadcast %10 : vector<1x128xf32> to vector<8x128xf32>
    %12 = arith.addf %9, %11 : vector<8x128xf32>
    %c0_11 = arith.constant 0 : index
    %c0_12 = arith.constant 0 : index
    %13 = vector.load %arg6[%c0_11, %c0_12] : memref<8x128xf32, #tpu.memory_space<vmem>>, vector<8x128xf32>
    tpu.vector_store %arg6[%c0_11, %c0_12], %12 {strides = array<i32>} : memref<8x128xf32, #tpu.memory_space<vmem>>, vector<8x128xf32>,
    return
  }
  func.func @transform_0(%arg0: i32) -> (i32, i32) {
    %c0_i32 = arith.constant 0 : i32
    %c0_i32_0 = arith.constant 0 : i32
    return %arg0, %c0_i32 : i32, i32
  }
  func.func @transform_1(%arg0: i32) -> (i32, i32) {
    %c0_i32 = arith.constant 0 : i32
    %c0_i32_0 = arith.constant 0 : i32
    %c0_i32_1 = arith.constant 0 : i32
    return %c0_i32, %c0_i32_0 : i32, i32
  }
  func.func @transform_2(%arg0: i32) -> (i32, i32) {
    %c0_i32 = arith.constant 0 : i32
    %c0_i32_0 = arith.constant 0 : i32
    %c0_i32_1 = arith.constant 0 : i32
    return %c0_i32, %c0_i32_0 : i32, i32
  }
  func.func @transform_3(%arg0: i32) -> (i32, i32) {
    %c0_i32 = arith.constant 0 : i32
    %c0_i32_0 = arith.constant 0 : i32
    %c0_i32_1 = arith.constant 0 : i32
    return %c0_i32, %c0_i32_0 : i32, i32
  }
  func.func @transform_4(%arg0: i32) -> (i32, i32) {
    %c0_i32 = arith.constant 0 : i32
    %c0_i32_0 = arith.constant 0 : i32
    %c0_i32_1 = arith.constant 0 : i32
    return %c0_i32, %c0_i32_0 : i32, i32
  }
  func.func @transform_5(%arg0: i32) -> (i32, i32) {
    %c0_i32 = arith.constant 0 : i32
    %c0_i32_0 = arith.constant 0 : i32
    return %arg0, %c0_i32 : i32, i32
  }
}

</mosaic_0001>

<bundles_post_ra>
// kernel: tpu_custom_call.1
= control target key start
LH: loop header
LB: loop body
LE: loop exit
PB: predicated region body
PF: predicated region fallthrough
CT: control target
= control target key end

     0   :  { %10 = vsyncpa [#allocation3], 0  ;;  %s4538_s0 = inlined_call_operand.hbm [shape: bf16[8,1536], index: 0, kind: input, shape index: {}]   ;;  %s4539_s1 = inlined_call_operand.hbm [shape: bf16[1536,512], index: 1, kind: input, shape index: {}]   ;;  %s4540_s2 = inlined_call_operand.hbm [shape: f32[1,512], index: 2, kind: input, shape index: {}]   ;;  %s4541_s3 = inlined_call_operand.hbm [shape: f32[512,128], index: 3, kind: input, shape index: {}]   ;;  %s4542_s4 = inlined_call_operand.hbm [shape: f32[1,128], index: 4, kind: input, shape index: {}]   ;;  %s4543_s5 = inlined_call_operand.hbm [shape: f32[8,128], index: 5, kind: output, shape index: {}]  }
   0x1   :  { %11 = vsyncpa [#allocation6], 0 }
   0x2   :  { %12 = vsyncpa [#allocation9], 0 }
   0x3   :  { %13 = vsyncpa [#allocation4], 0  ;;  %s4375_s18 = smov [#allocation5]  }
   0x4   :  { %s29_s19 = sshll.u32 %s4375_s18, 4  ;;  %s30_s19 = int_to_ptr.vmem [resolvable:$true] %s29_s19 }
   0x5   :  { %s4255_s20 = scalar_lea.vmem %s30_s19, 49152  ;;  %p4260_p1 = scmp.lt.s32.totalorder %s30_s19, %s30_s19 }
   0x6   :  { %p4256_p0 = scmp.ne.s32.totalorder %s30_s19, %s4255_s20  ;;  %p4261_p2 = scmp.lt.s32.totalorder %s4255_s20, %s4255_s20 }
   0x8   :  { %p4262_p3 = por %p4261_p2, %p4260_p1 }
   0xa   :  { %p4263_p4 = pnand %p4262_p3, %p4256_p0 }
   0xc   :  { %4266 = shalt.err (!%p4263_p4)
}
   0xd   :  { %s4376_s21 = smov 256   ;;  %s4377_s22 = smov 16  }
   0xe   :  { %35 = dma.hbm_to_vmem [thread:$0]  %s4539_s1, 49152, %s30_s19, [#allocation6], %s4376_s21, %s4376_s21, %s4377_s22  }
   0xf   :  { %s4378_s25 = smov [#allocation8]  }
  0x10   :  { %s51_s26 = sshll.u32 %s4378_s25, 4  ;;  %s52_s26 = int_to_ptr.vmem [resolvable:$true] %s51_s26 }
  0x11   :  { %s4275_s27 = scalar_lea.vmem %s52_s26, 8192  ;;  %p4280_p6 = scmp.lt.s32.totalorder %s52_s26, %s52_s26 }
  0x12   :  { %p4276_p5 = scmp.ne.s32.totalorder %s52_s26, %s4275_s27  ;;  %p4281_p7 = scmp.lt.s32.totalorder %s4275_s27, %s4275_s27 }
  0x14   :  { %p4282_p8 = por %p4281_p7, %p4280_p6 }
  0x16   :  { %p4283_p9 = pnand %p4282_p8, %p4276_p5 }
  0x18   :  { %4286 = shalt.err (!%p4283_p9)
}
  0x19   :  { %s4379_s28 = smov 128   ;;  %s4380_s29 = smov 8  }
  0x1a   :  { %57 = dma.hbm_to_vmem [thread:$0]  %s4541_s3, 8192, %s52_s26, [#allocation9], %s4379_s28, %s4379_s28, %s4380_s29  }
  0x1b   :  { %s4381_s7 = smov [#allocation2]   ;;  %s4382_s9 = smov [#allocation7]  }
  0x1c   :  { %s20_s8 = sshll.u32 %s4381_s7, 4  ;;  %s42_s1 = sshll.u32 %s4382_s9, 4  ;;  %s21_s8 = int_to_ptr.vmem [resolvable:$true] %s20_s8  ;;  %s43_s1 = int_to_ptr.vmem [resolvable:$true] %s42_s1 }
  0x1d   :  { %s4295_s10 = scalar_lea.vmem %s21_s8, 768  ;;  %p4300_p11 = scmp.lt.s32.totalorder %s21_s8, %s21_s8 }
  0x1e   :  { %p4296_p10 = scmp.ne.s32.totalorder %s21_s8, %s4295_s10  ;;  %p4301_p12 = scmp.lt.s32.totalorder %s4295_s10, %s4295_s10 }
  0x20   :  { %p4302_p13 = por %p4301_p12, %p4300_p11 }
  0x22   :  { %p4303_p0 = pnand %p4302_p13, %p4296_p10 }
  0x24   :  { %4306 = shalt.err (!%p4303_p0)
}
  0x25   :  { %23 = dma.hbm_to_vmem [thread:$0]  %s4538_s0, 768, %s21_s8, [#allocation3]  }
  0x26   :  { %s4315_s13 = scalar_lea.vmem %s43_s1, 64  ;;  %p4320_p2 = scmp.lt.s32.totalorder %s43_s1, %s43_s1 }
  0x27   :  { %p4316_p1 = scmp.ne.s32.totalorder %s43_s1, %s4315_s13  ;;  %p4321_p3 = scmp.lt.s32.totalorder %s4315_s13, %s4315_s13 }
  0x29   :  { %p4322_p4 = por %p4321_p3, %p4320_p2 }
  0x2b   :  { %p4323_p5 = pnand %p4322_p4, %p4316_p1 }
  0x2d   :  { %4326 = shalt.err (!%p4323_p5)
}
  0x2e   :  { %45 = dma.hbm_to_vmem [thread:$0]  %s4540_s2, 64, %s43_s1, [#allocation6]  }
  0x2f   :  { %s4383_s15 = smov [#allocation10]  }
  0x30   :  { %s64_s16 = sshll.u32 %s4383_s15, 4  ;;  %s65_s16 = int_to_ptr.vmem [resolvable:$true] %s64_s16 }
  0x31   :  { %s4335_s17 = scalar_lea.vmem %s65_s16, 16  ;;  %s4339_s18 = scalar_lea.vmem %s65_s16, 32 }
  0x32   :  { %p4336_p6 = scmp.ne.s32.totalorder %s65_s16, %s4335_s17  ;;  %p4340_p7 = scmp.lt.s32.totalorder %s65_s16, %s65_s16 }
  0x33   :  { %p4341_p8 = scmp.lt.s32.totalorder %s4339_s18, %s4335_s17 }
  0x35   :  { %p4342_p9 = por %p4341_p8, %p4340_p7 }
  0x37   :  { %p4343_p10 = pnand %p4342_p9, %p4336_p6 }
  0x39   :  { %4346 = shalt.err (!%p4343_p10)
}
  0x3a   :  { %67 = dma.hbm_to_vmem [thread:$0]  %s4542_s4, 16, %s65_s16, [#allocation9]  }
  0x3b   :  { %4367 = dma.done.wait [#allocation3], 768  }
  0x3c   :  { %4368 = vsyncadd [#allocation3], 4294966528 }
  0x3d   :  { %4369 = dma.done.wait [#allocation6], 49216  }
  0x3e   :  { %4370 = vsyncadd [#allocation6], 4294918080 }
  0x3f   :  { %4371 = dma.done.wait [#allocation9], 8208  }
  0x40   :  { %4372 = vsyncadd [#allocation9], 4294959088  ;;  %v3659_v0 = vld [vmem:[#allocation5 + $0xe4] ss:$16 sps:$4 sm:$0xff]   ;;  %v3663_v2 = vld [vmem:[#allocation5 + $0xe0] ss:$16 sps:$4 sm:$0xff]  }
  0x41   :  { %v3661_v1 = vld [vmem:[#allocation5 + $0x2e4] ss:$16 sps:$4 sm:$0xff]   ;;  %2457 = vmatprep.subr.bf16.mxu0 %v3659_v0  ;;  %v3664_v3 = vld [vmem:[#allocation5 + $0x2e0] ss:$16 sps:$4 sm:$0xff]   ;;  %v84_v48 = vld [vmem:[#allocation2 + $0x8] sm:$0xff]  ;;  %s4384_s2 = smov [#allocation11]  }
  0x42   :  { %2498 = vmatprep.subr.bf16.mxu1 %v3661_v1  ;;  %v3665_v4 = vld [vmem:[#allocation5 + $0xc4] ss:$16 sps:$4 sm:$0xff]   ;;  %2458 = vmatpush1.bf16.msra.mxu0 %v3663_v2  ;;  %v3669_v6 = vld [vmem:[#allocation5 + $0xc0] ss:$16 sps:$4 sm:$0xff]   ;;  %v4432_v51 = vcombine.high %v84_v48, %v84_v48  ;;  %s3171_s4 = sshll.u32 %s4384_s2, 4  ;;  %s3172_s4 = int_to_ptr.vmem [resolvable:$true] %s3171_s4 }
  0x43   :  { %2499 = vmatpush1.bf16.msra.mxu1 %v3664_v3  ;;  %v3667_v5 = vld [vmem:[#allocation5 + $0x2c4] ss:$16 sps:$4 sm:$0xff]   ;;  %2459 = vmatprep.subr.bf16.mxu0 %v3665_v4  ;;  %v3670_v7 = vld [vmem:[#allocation5 + $0x2c0] ss:$16 sps:$4 sm:$0xff]   ;;  %s4347_s20 = scalar_lea.vmem %s3172_s4, 128  ;;  %p4352_p12 = scmp.lt.s32.totalorder %s3172_s4, %s3172_s4 }
  0x44   :  { %2500 = vmatprep.subr.bf16.mxu1 %v3667_v5  ;;  %v3671_v8 = vld [vmem:[#allocation5 + $0xa4] ss:$16 sps:$4 sm:$0xff]   ;;  %v3675_v10 = vld [vmem:[#allocation5 + $0xa0] ss:$16 sps:$4 sm:$0xff]   ;;  %2530 = vmatprep.mubr.bf16.mxu1 %v4432_v51  ;;  %p4348_p11 = scmp.ne.s32.totalorder %s3172_s4, %s4347_s20  ;;  %p4353_p13 = scmp.lt.s32.totalorder %s4347_s20, %s4347_s20 }
  0x45   :  { %v3673_v9 = vld [vmem:[#allocation5 + $0x2a4] ss:$16 sps:$4 sm:$0xff]   ;;  %v3676_v11 = vld [vmem:[#allocation5 + $0x2a0] ss:$16 sps:$4 sm:$0xff]  }
  0x46   :  { %2460 = vmatpush1.bf16.msra.mxu0 %v3669_v6  ;;  %v3677_v12 = vld [vmem:[#allocation5 + $0x84] ss:$16 sps:$4 sm:$0xff]   ;;  %v3681_v14 = vld [vmem:[#allocation5 + $0x80] ss:$16 sps:$4 sm:$0xff]   ;;  %p4354_p0 = por %p4353_p13, %p4352_p12 }
  0x47   :  { %2501 = vmatpush1.bf16.msra.mxu1 %v3670_v7  ;;  %2461 = vmatprep.subr.bf16.mxu0 %v3671_v8  ;;  %v3679_v13 = vld [vmem:[#allocation5 + $0x284] ss:$16 sps:$4 sm:$0xff]   ;;  %v3682_v15 = vld [vmem:[#allocation5 + $0x280] ss:$16 sps:$4 sm:$0xff]   ;;  %v4438_v7 = vcombine.low %v84_v48, %v84_v48 }
  0x48   :  { %2502 = vmatprep.subr.bf16.mxu1 %v3673_v9  ;;  %v3683_v16 = vld [vmem:[#allocation5 + $0x64] ss:$16 sps:$4 sm:$0xff]   ;;  %v3687_v18 = vld [vmem:[#allocation5 + $0x60] ss:$16 sps:$4 sm:$0xff]   ;;  %p4355_p1 = pnand %p4354_p0, %p4348_p11 }
  0x49   :  { %v3685_v17 = vld [vmem:[#allocation5 + $0x264] ss:$16 sps:$4 sm:$0xff]   ;;  %v3688_v19 = vld [vmem:[#allocation5 + $0x260] ss:$16 sps:$4 sm:$0xff]  }
  0x4a   :  { %2462 = vmatpush1.bf16.msra.mxu0 %v3675_v10  ;;  %v3689_v20 = vld [vmem:[#allocation5 + $0x44] ss:$16 sps:$4 sm:$0xff]   ;;  %v3693_v22 = vld [vmem:[#allocation5 + $0x40] ss:$16 sps:$4 sm:$0xff]  }
  0x4b   :  { %2503 = vmatpush1.bf16.msra.mxu1 %v3676_v11  ;;  %2463 = vmatprep.subr.bf16.mxu0 %v3677_v12  ;;  %v3691_v21 = vld [vmem:[#allocation5 + $0x244] ss:$16 sps:$4 sm:$0xff]   ;;  %v3694_v23 = vld [vmem:[#allocation5 + $0x240] ss:$16 sps:$4 sm:$0xff]  }
  0x4c   :  { %2504 = vmatprep.subr.bf16.mxu1 %v3679_v13  ;;  %v3695_v24 = vld [vmem:[#allocation5 + $0x24] ss:$16 sps:$4 sm:$0xff]   ;;  %v3699_v26 = vld [vmem:[#allocation5 + $0x20] ss:$16 sps:$4 sm:$0xff]  }
  0x4d   :  { %v3697_v25 = vld [vmem:[#allocation5 + $0x224] ss:$16 sps:$4 sm:$0xff]   ;;  %v3700_v27 = vld [vmem:[#allocation5 + $0x220] ss:$16 sps:$4 sm:$0xff]  }
  0x4e   :  { %2464 = vmatpush1.bf16.msra.mxu0 %v3681_v14  ;;  %v3701_v28 = vld [vmem:[#allocation5 + $0x4] ss:$16 sps:$4 sm:$0xff]   ;;  %v3705_v30 = vld [vmem:[#allocation5] ss:$16 sps:$4 sm:$0xff]  }
  0x4f   :  { %2505 = vmatpush1.bf16.msra.mxu1 %v3682_v15  ;;  %2465 = vmatprep.subr.bf16.mxu0 %v3683_v16  ;;  %v3703_v29 = vld [vmem:[#allocation5 + $0x204] ss:$16 sps:$4 sm:$0xff]   ;;  %v3706_v31 = vld [vmem:[#allocation5 + $0x200] ss:$16 sps:$4 sm:$0xff]  }
  0x50   :  { %2506 = vmatprep.subr.bf16.mxu1 %v3685_v17  ;;  %v3707_v32 = vld [vmem:[#allocation5 + $0x1e4] ss:$16 sps:$4 sm:$0xff]   ;;  %v3711_v34 = vld [vmem:[#allocation5 + $0x1e0] ss:$16 sps:$4 sm:$0xff]  }
  0x51   :  { %v3709_v33 = vld [vmem:[#allocation5 + $0x3e4] ss:$16 sps:$4 sm:$0xff]   ;;  %v3712_v35 = vld [vmem:[#allocation5 + $0x3e0] ss:$16 sps:$4 sm:$0xff]  }
  0x52   :  { %2466 = vmatpush1.bf16.msra.mxu0 %v3687_v18  ;;  %v3713_v36 = vld [vmem:[#allocation5 + $0x1c4] ss:$16 sps:$4 sm:$0xff]   ;;  %v3717_v38 = vld [vmem:[#allocation5 + $0x1c0] ss:$16 sps:$4 sm:$0xff]  }
  0x53   :  { %2507 = vmatpush1.bf16.msra.mxu1 %v3688_v19  ;;  %2467 = vmatprep.subr.bf16.mxu0 %v3689_v20  ;;  %v3715_v37 = vld [vmem:[#allocation5 + $0x3c4] ss:$16 sps:$4 sm:$0xff]   ;;  %v3718_v39 = vld [vmem:[#allocation5 + $0x3c0] ss:$16 sps:$4 sm:$0xff]  }
  0x54   :  { %2508 = vmatprep.subr.bf16.mxu1 %v3691_v21  ;;  %v3719_v40 = vld [vmem:[#allocation5 + $0x1a4] ss:$16 sps:$4 sm:$0xff]   ;;  %v3723_v42 = vld [vmem:[#allocation5 + $0x1a0] ss:$16 sps:$4 sm:$0xff]  }
  0x55   :  { %v3721_v41 = vld [vmem:[#allocation5 + $0x3a4] ss:$16 sps:$4 sm:$0xff]   ;;  %v3724_v43 = vld [vmem:[#allocation5 + $0x3a0] ss:$16 sps:$4 sm:$0xff]  }
  0x56   :  { %2468 = vmatpush1.bf16.msra.mxu0 %v3693_v22  ;;  %v3725_v44 = vld [vmem:[#allocation5 + $0x184] ss:$16 sps:$4 sm:$0xff]   ;;  %v3729_v49 = vld [vmem:[#allocation5 + $0x180] ss:$16 sps:$4 sm:$0xff]  }
  0x57   :  { %2509 = vmatpush1.bf16.msra.mxu1 %v3694_v23  ;;  %2469 = vmatprep.subr.bf16.mxu0 %v3695_v24  ;;  %v3727_v45 = vld [vmem:[#allocation5 + $0x384] ss:$16 sps:$4 sm:$0xff]   ;;  %v3730_v50 = vld [vmem:[#allocation5 + $0x380] ss:$16 sps:$4 sm:$0xff]  }
  0x58   :  { %2510 = vmatprep.subr.bf16.mxu1 %v3697_v25  ;;  %v83_v46 = vld [vmem:[#allocation2] sm:$0xff] }
  0x59   :  { %v4430_v47 = vcombine.high %v83_v46, %v83_v46  ;;  %v3731_v52 = vld [vmem:[#allocation5 + $0x164] ss:$16 sps:$4 sm:$0xff]   ;;  %v3735_v54 = vld [vmem:[#allocation5 + $0x160] ss:$16 sps:$4 sm:$0xff]   ;;  %v4436_v6 = vcombine.low %v83_v46, %v83_v46 }
  0x5a   :  { %2470 = vmatpush1.bf16.msra.mxu0 %v3699_v26  ;;  %v3733_v53 = vld [vmem:[#allocation5 + $0x364] ss:$16 sps:$4 sm:$0xff]   ;;  %v3736_v55 = vld [vmem:[#allocation5 + $0x360] ss:$16 sps:$4 sm:$0xff]  }
  0x5b   :  { %2511 = vmatpush1.bf16.msra.mxu1 %v3700_v27  ;;  %2471 = vmatprep.subr.bf16.mxu0 %v3701_v28  ;;  %v3737_v56 = vld [vmem:[#allocation5 + $0x144] ss:$16 sps:$4 sm:$0xff]   ;;  %v3741_v58 = vld [vmem:[#allocation5 + $0x140] ss:$16 sps:$4 sm:$0xff]  }
  0x5c   :  { %2512 = vmatprep.subr.bf16.mxu1 %v3703_v29  ;;  %2489 = vmatprep.mubr.bf16.mxu0 %v4430_v47  ;;  %v3739_v57 = vld [vmem:[#allocation5 + $0x344] ss:$16 sps:$4 sm:$0xff]   ;;  %v3742_v59 = vld [vmem:[#allocation5 + $0x340] ss:$16 sps:$4 sm:$0xff]  }
  0x5d   :  { %v3743_v60 = vld [vmem:[#allocation5 + $0x124] ss:$16 sps:$4 sm:$0xff]   ;;  %v3747_v62 = vld [vmem:[#allocation5 + $0x120] ss:$16 sps:$4 sm:$0xff]  }
  0x5e   :  { %2472 = vmatpush1.bf16.msra.mxu0 %v3705_v30  ;;  %v3745_v61 = vld [vmem:[#allocation5 + $0x324] ss:$16 sps:$4 sm:$0xff]   ;;  %v3748_v63 = vld [vmem:[#allocation5 + $0x320] ss:$16 sps:$4 sm:$0xff]  }
  0x5f   :  { %2513 = vmatpush1.bf16.msra.mxu1 %v3706_v31  ;;  %2473 = vmatprep.subr.bf16.mxu0 %v3707_v32  ;;  %v3749_v0 = vld [vmem:[#allocation5 + $0x104] ss:$16 sps:$4 sm:$0xff]   ;;  %v3753_v2 = vld [vmem:[#allocation5 + $0x100] ss:$16 sps:$4 sm:$0xff]  }
  0x60   :  { %2514 = vmatprep.subr.bf16.mxu1 %v3709_v33  ;;  %v3751_v1 = vld [vmem:[#allocation5 + $0x304] ss:$16 sps:$4 sm:$0xff]   ;;  %v3754_v3 = vld [vmem:[#allocation5 + $0x300] ss:$16 sps:$4 sm:$0xff]   ;;  %v4444_v33 = vld [vmem:[#allocation2 + $0x18] sm:$0xff] }
  0x61   :  { %v3761_v4 = vld [vmem:[#allocation5 + $0x4e4] ss:$16 sps:$4 sm:$0xff]   ;;  %v3759_v8 = vld [vmem:[#allocation5 + $0x4e0] ss:$16 sps:$4 sm:$0xff]  }
  0x62   :  { %2474 = vmatpush2.bf16.msra.mxu0 %v3711_v34  ;;  %v3764_v5 = vld [vmem:[#allocation5 + $0x6e4] ss:$16 sps:$4 sm:$0xff]   ;;  %v3762_v9 = vld [vmem:[#allocation5 + $0x6e0] ss:$16 sps:$4 sm:$0xff]  }
  0x63   :  { %2515 = vmatpush2.bf16.msra.mxu1 %v3712_v35  ;;  %2475 = vmatprep.subr.bf16.mxu0 %v3713_v36  ;;  %v3767_v10 = vld [vmem:[#allocation5 + $0x4c4] ss:$16 sps:$4 sm:$0xff]   ;;  %v3765_v12 = vld [vmem:[#allocation5 + $0x4c0] ss:$16 sps:$4 sm:$0xff]  }
  0x64   :  { %2516 = vmatprep.subr.bf16.mxu1 %v3715_v37  ;;  %v3770_v11 = vld [vmem:[#allocation5 + $0x6c4] ss:$16 sps:$4 sm:$0xff]   ;;  %v3768_v13 = vld [vmem:[#allocation5 + $0x6c0] ss:$16 sps:$4 sm:$0xff]   ;;  %v4452_v37 = vcombine.high %v4444_v33, %v4444_v33 }
  0x65   :  { %v3773_v14 = vld [vmem:[#allocation5 + $0x4a4] ss:$16 sps:$4 sm:$0xff]   ;;  %v3771_v16 = vld [vmem:[#allocation5 + $0x4a0] ss:$16 sps:$4 sm:$0xff]  }
  0x66   :  { %2476 = vmatpush2.bf16.msra.mxu0 %v3717_v38  ;;  %v3776_v15 = vld [vmem:[#allocation5 + $0x6a4] ss:$16 sps:$4 sm:$0xff]   ;;  %v3774_v17 = vld [vmem:[#allocation5 + $0x6a0] ss:$16 sps:$4 sm:$0xff]  }
  0x67   :  { %2517 = vmatpush2.bf16.msra.mxu1 %v3718_v39  ;;  %2477 = vmatprep.subr.bf16.mxu0 %v3719_v40  ;;  %v3779_v18 = vld [vmem:[#allocation5 + $0x484] ss:$16 sps:$4 sm:$0xff]   ;;  %v3777_v20 = vld [vmem:[#allocation5 + $0x480] ss:$16 sps:$4 sm:$0xff]  }
  0x68   :  { %2518 = vmatprep.subr.bf16.mxu1 %v3721_v41  ;;  %v3782_v19 = vld [vmem:[#allocation5 + $0x684] ss:$16 sps:$4 sm:$0xff]   ;;  %v3780_v21 = vld [vmem:[#allocation5 + $0x680] ss:$16 sps:$4 sm:$0xff]  }
  0x69   :  { %v3785_v22 = vld [vmem:[#allocation5 + $0x464] ss:$16 sps:$4 sm:$0xff]   ;;  %v3783_v24 = vld [vmem:[#allocation5 + $0x460] ss:$16 sps:$4 sm:$0xff]  }
  0x6a   :  { %2478 = vmatpush2.bf16.msra.mxu0 %v3723_v42  ;;  %v3788_v23 = vld [vmem:[#allocation5 + $0x664] ss:$16 sps:$4 sm:$0xff]   ;;  %v3786_v25 = vld [vmem:[#allocation5 + $0x660] ss:$16 sps:$4 sm:$0xff]  }
  0x6b   :  { %2519 = vmatpush2.bf16.msra.mxu1 %v3724_v43  ;;  %2479 = vmatprep.subr.bf16.mxu0 %v3725_v44  ;;  %v3791_v26 = vld [vmem:[#allocation5 + $0x444] ss:$16 sps:$4 sm:$0xff]   ;;  %v3789_v28 = vld [vmem:[#allocation5 + $0x440] ss:$16 sps:$4 sm:$0xff]  }
  0x6c   :  { %2520 = vmatprep.subr.bf16.mxu1 %v3727_v45  ;;  %v3794_v27 = vld [vmem:[#allocation5 + $0x644] ss:$16 sps:$4 sm:$0xff]   ;;  %v3792_v29 = vld [vmem:[#allocation5 + $0x640] ss:$16 sps:$4 sm:$0xff]  }
  0x6d   :  { %v3797_v30 = vld [vmem:[#allocation5 + $0x424] ss:$16 sps:$4 sm:$0xff]   ;;  %v3795_v34 = vld [vmem:[#allocation5 + $0x420] ss:$16 sps:$4 sm:$0xff]  }
  0x6e   :  { %2480 = vmatpush2.bf16.msra.mxu0 %v3729_v49  ;;  %v3800_v31 = vld [vmem:[#allocation5 + $0x624] ss:$16 sps:$4 sm:$0xff]   ;;  %v3798_v35 = vld [vmem:[#allocation5 + $0x620] ss:$16 sps:$4 sm:$0xff]  }
  0x6f   :  { %2521 = vmatpush2.bf16.msra.mxu1 %v3730_v50  ;;  %2481 = vmatprep.subr.bf16.mxu0 %v3731_v52  ;;  %v4442_v32 = vld [vmem:[#allocation2 + $0x10] sm:$0xff] }
  0x70   :  { %2522 = vmatprep.subr.bf16.mxu1 %v3733_v53  ;;  %v4448_v36 = vcombine.high %v4442_v32, %v4442_v32  ;;  %v3803_v38 = vld [vmem:[#allocation5 + $0x404] ss:$16 sps:$4 sm:$0xff]   ;;  %v3801_v40 = vld [vmem:[#allocation5 + $0x400] ss:$16 sps:$4 sm:$0xff]  }
  0x71   :  { %v3806_v39 = vld [vmem:[#allocation5 + $0x604] ss:$16 sps:$4 sm:$0xff]   ;;  %v3804_v41 = vld [vmem:[#allocation5 + $0x600] ss:$16 sps:$4 sm:$0xff]  }
  0x72   :  { %2482 = vmatpush2.bf16.msra.mxu0 %v3735_v54  ;;  %v3809_v42 = vld [vmem:[#allocation5 + $0x5e4] ss:$16 sps:$4 sm:$0xff]   ;;  %v3807_v44 = vld [vmem:[#allocation5 + $0x5e0] ss:$16 sps:$4 sm:$0xff]  }
  0x73   :  { %2523 = vmatpush2.bf16.msra.mxu1 %v3736_v55  ;;  %2483 = vmatprep.subr.bf16.mxu0 %v3737_v56  ;;  %v3812_v43 = vld [vmem:[#allocation5 + $0x7e4] ss:$16 sps:$4 sm:$0xff]   ;;  %v3810_v45 = vld [vmem:[#allocation5 + $0x7e0] ss:$16 sps:$4 sm:$0xff]  }
  0x74   :  { %2524 = vmatprep.subr.bf16.mxu1 %v3739_v57  ;;  %v3815_v46 = vld [vmem:[#allocation5 + $0x5c4] ss:$16 sps:$4 sm:$0xff]   ;;  %v3813_v49 = vld [vmem:[#allocation5 + $0x5c0] ss:$16 sps:$4 sm:$0xff]  }
  0x75   :  { %v3818_v48 = vld [vmem:[#allocation5 + $0x7c4] ss:$16 sps:$4 sm:$0xff]   ;;  %v3816_v50 = vld [vmem:[#allocation5 + $0x7c0] ss:$16 sps:$4 sm:$0xff]  }
  0x76   :  { %2484 = vmatpush2.bf16.msra.mxu0 %v3741_v58  ;;  %v3821_v52 = vld [vmem:[#allocation5 + $0x5a4] ss:$16 sps:$4 sm:$0xff]   ;;  %v3819_v54 = vld [vmem:[#allocation5 + $0x5a0] ss:$16 sps:$4 sm:$0xff]  }
  0x77   :  { %2525 = vmatpush2.bf16.msra.mxu1 %v3742_v59  ;;  %2485 = vmatprep.subr.bf16.mxu0 %v3743_v60  ;;  %v3824_v53 = vld [vmem:[#allocation5 + $0x7a4] ss:$16 sps:$4 sm:$0xff]   ;;  %v3822_v55 = vld [vmem:[#allocation5 + $0x7a0] ss:$16 sps:$4 sm:$0xff]  }
  0x78   :  { %2526 = vmatprep.subr.bf16.mxu1 %v3745_v61  ;;  %v3827_v56 = vld [vmem:[#allocation5 + $0x584] ss:$16 sps:$4 sm:$0xff]   ;;  %v3825_v58 = vld [vmem:[#allocation5 + $0x580] ss:$16 sps:$4 sm:$0xff]  }
  0x79   :  { %v3830_v57 = vld [vmem:[#allocation5 + $0x784] ss:$16 sps:$4 sm:$0xff]   ;;  %v3828_v59 = vld [vmem:[#allocation5 + $0x780] ss:$16 sps:$4 sm:$0xff]  }
  0x7a   :  { %2486 = vmatpush2.bf16.msra.mxu0 %v3747_v62  ;;  %v3833_v60 = vld [vmem:[#allocation5 + $0x564] ss:$16 sps:$4 sm:$0xff]   ;;  %v3831_v62 = vld [vmem:[#allocation5 + $0x560] ss:$16 sps:$4 sm:$0xff]  }
  0x7b   :  { %2527 = vmatpush2.bf16.msra.mxu1 %v3748_v63  ;;  %2487 = vmatprep.subr.bf16.mxu0 %v3749_v0  ;;  %v3836_v61 = vld [vmem:[#allocation5 + $0x764] ss:$16 sps:$4 sm:$0xff]   ;;  %v3834_v63 = vld [vmem:[#allocation5 + $0x760] ss:$16 sps:$4 sm:$0xff]  }
  0x7c   :  { %2528 = vmatprep.subr.bf16.mxu1 %v3751_v1  ;;  %v3839_v0 = vld [vmem:[#allocation5 + $0x544] ss:$16 sps:$4 sm:$0xff]  }
  0x7d   :  { %v3842_v1 = vld [vmem:[#allocation5 + $0x744] ss:$16 sps:$4 sm:$0xff]  }
  0x7e   :  { %2488 = vmatpush2.bf16.msra.mxu0 %v3753_v2  ;;  %v3837_v2 = vld [vmem:[#allocation5 + $0x540] ss:$16 sps:$4 sm:$0xff]  }
  0x7f   :  { %2529 = vmatpush2.bf16.msra.mxu1 %v3754_v3  ;;  %2539 = vmatprep.subr.bf16.mxu0 %v3761_v4  ;;  %v3840_v3 = vld [vmem:[#allocation5 + $0x740] ss:$16 sps:$4 sm:$0xff]   ;;  %v3845_v4 = vld [vmem:[#allocation5 + $0x524] ss:$16 sps:$4 sm:$0xff]  }
  0x80   :  { %2580 = vmatprep.subr.bf16.mxu1 %v3764_v5  ;;  %v3848_v5 = vld [vmem:[#allocation5 + $0x724] ss:$16 sps:$4 sm:$0xff]  }
  0x81   :  { %2490 = vmatmul.mubr.bf16.vlgmr.msra.gmra.mxu0 %v4436_v6 }
  0x82   :  { %2531 = vmatmul.mubr.bf16.vlgmr.msra.gmra.mxu1 %v4438_v7  ;;  %2540 = vmatpush1.bf16.msra.mxu0 %v3759_v8  ;;  %v3843_v8 = vld [vmem:[#allocation5 + $0x520] ss:$16 sps:$4 sm:$0xff]  }
  0x83   :  { %2581 = vmatpush1.bf16.msra.mxu1 %v3762_v9  ;;  %2541 = vmatprep.subr.bf16.mxu0 %v3767_v10  ;;  %v3846_v9 = vld [vmem:[#allocation5 + $0x720] ss:$16 sps:$4 sm:$0xff]   ;;  %v3851_v10 = vld [vmem:[#allocation5 + $0x504] ss:$16 sps:$4 sm:$0xff]  }
  0x84   :  { %2582 = vmatprep.subr.bf16.mxu1 %v3770_v11  ;;  %2571 = vmatprep.mubr.bf16.mxu0 %v4448_v36  ;;  %v3854_v11 = vld [vmem:[#allocation5 + $0x704] ss:$16 sps:$4 sm:$0xff]  }
  0x85   :  { %2612 = vmatprep.mubr.bf16.mxu1 %v4452_v37 }
  0x86   :  { %2542 = vmatpush1.bf16.msra.mxu0 %v3765_v12  ;;  %v3849_v12 = vld [vmem:[#allocation5 + $0x500] ss:$16 sps:$4 sm:$0xff]  }
  0x87   :  { %2583 = vmatpush1.bf16.msra.mxu1 %v3768_v13  ;;  %2543 = vmatprep.subr.bf16.mxu0 %v3773_v14  ;;  %v3852_v13 = vld [vmem:[#allocation5 + $0x700] ss:$16 sps:$4 sm:$0xff]   ;;  %v3861_v14 = vld [vmem:[#allocation5 + $0x8e4] ss:$16 sps:$4 sm:$0xff]  }
  0x88   :  { %2584 = vmatprep.subr.bf16.mxu1 %v3776_v15  ;;  %v3864_v15 = vld [vmem:[#allocation5 + $0xae4] ss:$16 sps:$4 sm:$0xff]  }
  0x8a   :  { %2544 = vmatpush1.bf16.msra.mxu0 %v3771_v16  ;;  %v4458_v16 = vcombine.low %v4442_v32, %v4442_v32  ;;  %v3879_v32 = vld [vmem:[#allocation5 + $0x884] ss:$16 sps:$4 sm:$0xff]  }
  0x8b   :  { %2585 = vmatpush1.bf16.msra.mxu1 %v3774_v17  ;;  %2545 = vmatprep.subr.bf16.mxu0 %v3779_v18  ;;  %v4462_v17 = vcombine.low %v4444_v33, %v4444_v33  ;;  %v3859_v18 = vld [vmem:[#allocation5 + $0x8e0] ss:$16 sps:$4 sm:$0xff]   ;;  %v3882_v33 = vld [vmem:[#allocation5 + $0xa84] ss:$16 sps:$4 sm:$0xff]  }
  0x8c   :  { %2586 = vmatprep.subr.bf16.mxu1 %v3782_v19  ;;  %v3862_v19 = vld [vmem:[#allocation5 + $0xae0] ss:$16 sps:$4 sm:$0xff]  }
  0x8e   :  { %2546 = vmatpush1.bf16.msra.mxu0 %v3777_v20  ;;  %v3867_v20 = vld [vmem:[#allocation5 + $0x8c4] ss:$16 sps:$4 sm:$0xff]  }
  0x8f   :  { %2587 = vmatpush1.bf16.msra.mxu1 %v3780_v21  ;;  %2547 = vmatprep.subr.bf16.mxu0 %v3785_v22  ;;  %v3870_v21 = vld [vmem:[#allocation5 + $0xac4] ss:$16 sps:$4 sm:$0xff]  }
  0x90   :  { %2588 = vmatprep.subr.bf16.mxu1 %v3788_v23  ;;  %v4464_v22 = vld [vmem:[#allocation2 + $0x20] sm:$0xff]  ;;  %v4466_v23 = vld [vmem:[#allocation2 + $0x28] sm:$0xff] }
  0x92   :  { %2548 = vmatpush1.bf16.msra.mxu0 %v3783_v24  ;;  %v4470_v24 = vcombine.high %v4464_v22, %v4464_v22 }
  0x93   :  { %2589 = vmatpush1.bf16.msra.mxu1 %v3786_v25  ;;  %2549 = vmatprep.subr.bf16.mxu0 %v3791_v26  ;;  %v4474_v25 = vcombine.high %v4466_v23, %v4466_v23  ;;  %v3865_v26 = vld [vmem:[#allocation5 + $0x8c0] ss:$16 sps:$4 sm:$0xff]  }
  0x94   :  { %2590 = vmatprep.subr.bf16.mxu1 %v3794_v27  ;;  %v3868_v27 = vld [vmem:[#allocation5 + $0xac0] ss:$16 sps:$4 sm:$0xff]  }
  0x96   :  { %2550 = vmatpush1.bf16.msra.mxu0 %v3789_v28  ;;  %v3873_v28 = vld [vmem:[#allocation5 + $0x8a4] ss:$16 sps:$4 sm:$0xff]  }
  0x97   :  { %2591 = vmatpush1.bf16.msra.mxu1 %v3792_v29  ;;  %2551 = vmatprep.subr.bf16.mxu0 %v3797_v30  ;;  %v3876_v29 = vld [vmem:[#allocation5 + $0xaa4] ss:$16 sps:$4 sm:$0xff]   ;;  %v3871_v30 = vld [vmem:[#allocation5 + $0x8a0] ss:$16 sps:$4 sm:$0xff]  }
  0x98   :  { %2592 = vmatprep.subr.bf16.mxu1 %v3800_v31  ;;  %v3874_v31 = vld [vmem:[#allocation5 + $0xaa0] ss:$16 sps:$4 sm:$0xff]  }
  0x9a   :  { %2552 = vmatpush1.bf16.msra.mxu0 %v3795_v34  ;;  %v3877_v34 = vld [vmem:[#allocation5 + $0x880] ss:$16 sps:$4 sm:$0xff]  }
  0x9b   :  { %2593 = vmatpush1.bf16.msra.mxu1 %v3798_v35  ;;  %2553 = vmatprep.subr.bf16.mxu0 %v3803_v38  ;;  %v3880_v35 = vld [vmem:[#allocation5 + $0xa80] ss:$16 sps:$4 sm:$0xff]   ;;  %v3885_v38 = vld [vmem:[#allocation5 + $0x864] ss:$16 sps:$4 sm:$0xff]  }
  0x9c   :  { %2594 = vmatprep.subr.bf16.mxu1 %v3806_v39  ;;  %v3888_v39 = vld [vmem:[#allocation5 + $0xa64] ss:$16 sps:$4 sm:$0xff]  }
  0x9e   :  { %2554 = vmatpush1.bf16.msra.mxu0 %v3801_v40  ;;  %v3883_v40 = vld [vmem:[#allocation5 + $0x860] ss:$16 sps:$4 sm:$0xff]  }
  0x9f   :  { %2595 = vmatpush1.bf16.msra.mxu1 %v3804_v41  ;;  %2555 = vmatprep.subr.bf16.mxu0 %v3809_v42  ;;  %v3886_v41 = vld [vmem:[#allocation5 + $0xa60] ss:$16 sps:$4 sm:$0xff]   ;;  %v3891_v42 = vld [vmem:[#allocation5 + $0x844] ss:$16 sps:$4 sm:$0xff]  }
  0xa0   :  { %2596 = vmatprep.subr.bf16.mxu1 %v3812_v43  ;;  %v3894_v43 = vld [vmem:[#allocation5 + $0xa44] ss:$16 sps:$4 sm:$0xff]  }
  0xa2   :  { %2556 = vmatpush2.bf16.msra.mxu0 %v3807_v44  ;;  %v3889_v44 = vld [vmem:[#allocation5 + $0x840] ss:$16 sps:$4 sm:$0xff]  }
  0xa3   :  { %2597 = vmatpush2.bf16.msra.mxu1 %v3810_v45  ;;  %2557 = vmatprep.subr.bf16.mxu0 %v3815_v46  ;;  %v3892_v45 = vld [vmem:[#allocation5 + $0xa40] ss:$16 sps:$4 sm:$0xff]   ;;  %v3897_v46 = vld [vmem:[#allocation5 + $0x824] ss:$16 sps:$4 sm:$0xff]  }
  0xa4   :  { %2598 = vmatprep.subr.bf16.mxu1 %v3818_v48  ;;  %v3900_v48 = vld [vmem:[#allocation5 + $0xa24] ss:$16 sps:$4 sm:$0xff]  }
  0xa6   :  { %2558 = vmatpush2.bf16.msra.mxu0 %v3813_v49  ;;  %v3895_v49 = vld [vmem:[#allocation5 + $0x820] ss:$16 sps:$4 sm:$0xff]  }
  0xa7   :  { %2599 = vmatpush2.bf16.msra.mxu1 %v3816_v50  ;;  %2559 = vmatprep.subr.bf16.mxu0 %v3821_v52  ;;  %v3898_v50 = vld [vmem:[#allocation5 + $0xa20] ss:$16 sps:$4 sm:$0xff]   ;;  %v3903_v52 = vld [vmem:[#allocation5 + $0x804] ss:$16 sps:$4 sm:$0xff]  }
  0xa8   :  { %2600 = vmatprep.subr.bf16.mxu1 %v3824_v53  ;;  %v3906_v53 = vld [vmem:[#allocation5 + $0xa04] ss:$16 sps:$4 sm:$0xff]  }
  0xaa   :  { %2560 = vmatpush2.bf16.msra.mxu0 %v3819_v54  ;;  %v3901_v54 = vld [vmem:[#allocation5 + $0x800] ss:$16 sps:$4 sm:$0xff]  }
  0xab   :  { %2601 = vmatpush2.bf16.msra.mxu1 %v3822_v55  ;;  %2561 = vmatprep.subr.bf16.mxu0 %v3827_v56  ;;  %v3904_v55 = vld [vmem:[#allocation5 + $0xa00] ss:$16 sps:$4 sm:$0xff]   ;;  %v3909_v56 = vld [vmem:[#allocation5 + $0x9e4] ss:$16 sps:$4 sm:$0xff]  }
  0xac   :  { %2602 = vmatprep.subr.bf16.mxu1 %v3830_v57  ;;  %v3912_v57 = vld [vmem:[#allocation5 + $0xbe4] ss:$16 sps:$4 sm:$0xff]  }
  0xae   :  { %2562 = vmatpush2.bf16.msra.mxu0 %v3825_v58  ;;  %v3907_v58 = vld [vmem:[#allocation5 + $0x9e0] ss:$16 sps:$4 sm:$0xff]  }
  0xaf   :  { %2603 = vmatpush2.bf16.msra.mxu1 %v3828_v59  ;;  %2563 = vmatprep.subr.bf16.mxu0 %v3833_v60  ;;  %v3910_v59 = vld [vmem:[#allocation5 + $0xbe0] ss:$16 sps:$4 sm:$0xff]   ;;  %v3915_v60 = vld [vmem:[#allocation5 + $0x9c4] ss:$16 sps:$4 sm:$0xff]  }
  0xb0   :  { %2604 = vmatprep.subr.bf16.mxu1 %v3836_v61  ;;  %v3918_v61 = vld [vmem:[#allocation5 + $0xbc4] ss:$16 sps:$4 sm:$0xff]  }
  0xb2   :  { %2564 = vmatpush2.bf16.msra.mxu0 %v3831_v62  ;;  %v3913_v62 = vld [vmem:[#allocation5 + $0x9c0] ss:$16 sps:$4 sm:$0xff]  }
  0xb3   :  { %2605 = vmatpush2.bf16.msra.mxu1 %v3834_v63  ;;  %2565 = vmatprep.subr.bf16.mxu0 %v3839_v0  ;;  %v3916_v63 = vld [vmem:[#allocation5 + $0xbc0] ss:$16 sps:$4 sm:$0xff]   ;;  %v3921_v0 = vld [vmem:[#allocation5 + $0x9a4] ss:$16 sps:$4 sm:$0xff]  }
  0xb4   :  { %2606 = vmatprep.subr.bf16.mxu1 %v3842_v1  ;;  %v3924_v1 = vld [vmem:[#allocation5 + $0xba4] ss:$16 sps:$4 sm:$0xff]  }
  0xb6   :  { %2566 = vmatpush2.bf16.msra.mxu0 %v3837_v2  ;;  %v3919_v2 = vld [vmem:[#allocation5 + $0x9a0] ss:$16 sps:$4 sm:$0xff]  }
  0xb7   :  { %2607 = vmatpush2.bf16.msra.mxu1 %v3840_v3  ;;  %2567 = vmatprep.subr.bf16.mxu0 %v3845_v4  ;;  %v3922_v3 = vld [vmem:[#allocation5 + $0xba0] ss:$16 sps:$4 sm:$0xff]   ;;  %v3927_v4 = vld [vmem:[#allocation5 + $0x984] ss:$16 sps:$4 sm:$0xff]  }
  0xb8   :  { %2608 = vmatprep.subr.bf16.mxu1 %v3848_v5  ;;  %v3930_v5 = vld [vmem:[#allocation5 + $0xb84] ss:$16 sps:$4 sm:$0xff]  }
  0xba   :  { %2568 = vmatpush2.bf16.msra.mxu0 %v3843_v8  ;;  %v3925_v8 = vld [vmem:[#allocation5 + $0x980] ss:$16 sps:$4 sm:$0xff]  }
  0xbb   :  { %2609 = vmatpush2.bf16.msra.mxu1 %v3846_v9  ;;  %2569 = vmatprep.subr.bf16.mxu0 %v3851_v10  ;;  %v3928_v9 = vld [vmem:[#allocation5 + $0xb80] ss:$16 sps:$4 sm:$0xff]   ;;  %v3933_v10 = vld [vmem:[#allocation5 + $0x964] ss:$16 sps:$4 sm:$0xff]  }
  0xbc   :  { %2610 = vmatprep.subr.bf16.mxu1 %v3854_v11  ;;  %v3936_v11 = vld [vmem:[#allocation5 + $0xb64] ss:$16 sps:$4 sm:$0xff]  }
  0xbe   :  { %2570 = vmatpush2.bf16.msra.mxu0 %v3849_v12  ;;  %v3931_v12 = vld [vmem:[#allocation5 + $0x960] ss:$16 sps:$4 sm:$0xff]  }
  0xbf   :  { %2611 = vmatpush2.bf16.msra.mxu1 %v3852_v13  ;;  %2621 = vmatprep.subr.bf16.mxu0 %v3861_v14  ;;  %v3934_v13 = vld [vmem:[#allocation5 + $0xb60] ss:$16 sps:$4 sm:$0xff]   ;;  %v3939_v14 = vld [vmem:[#allocation5 + $0x944] ss:$16 sps:$4 sm:$0xff]  }
  0xc0   :  { %2662 = vmatprep.subr.bf16.mxu1 %v3864_v15  ;;  %v3942_v15 = vld [vmem:[#allocation5 + $0xb44] ss:$16 sps:$4 sm:$0xff]  }
  0xc1   :  { %2572 = vmatmul.mubr.bf16.vlgmr.msra.gmra.mxu0 %v4458_v16 }
  0xc2   :  { %2613 = vmatmul.mubr.bf16.vlgmr.msra.gmra.mxu1 %v4462_v17  ;;  %2622 = vmatpush1.bf16.msra.mxu0 %v3859_v18  ;;  %v3937_v18 = vld [vmem:[#allocation5 + $0x940] ss:$16 sps:$4 sm:$0xff]  }
  0xc3   :  { %2663 = vmatpush1.bf16.msra.mxu1 %v3862_v19  ;;  %2623 = vmatprep.subr.bf16.mxu0 %v3867_v20  ;;  %v3940_v19 = vld [vmem:[#allocation5 + $0xb40] ss:$16 sps:$4 sm:$0xff]   ;;  %v3945_v20 = vld [vmem:[#allocation5 + $0x924] ss:$16 sps:$4 sm:$0xff]  }
  0xc4   :  { %2664 = vmatprep.subr.bf16.mxu1 %v3870_v21  ;;  %2653 = vmatprep.mubr.bf16.mxu0 %v4470_v24  ;;  %v3948_v21 = vld [vmem:[#allocation5 + $0xb24] ss:$16 sps:$4 sm:$0xff]  }
  0xc5   :  { %2694 = vmatprep.mubr.bf16.mxu1 %v4474_v25 }
  0xc6   :  { %2624 = vmatpush1.bf16.msra.mxu0 %v3865_v26  ;;  %v3943_v26 = vld [vmem:[#allocation5 + $0x920] ss:$16 sps:$4 sm:$0xff]  }
  0xc7   :  { %2665 = vmatpush1.bf16.msra.mxu1 %v3868_v27  ;;  %2625 = vmatprep.subr.bf16.mxu0 %v3873_v28  ;;  %v3946_v27 = vld [vmem:[#allocation5 + $0xb20] ss:$16 sps:$4 sm:$0xff]   ;;  %v3951_v28 = vld [vmem:[#allocation5 + $0x904] ss:$16 sps:$4 sm:$0xff]  }
  0xc8   :  { %2666 = vmatprep.subr.bf16.mxu1 %v3876_v29  ;;  %v3954_v29 = vld [vmem:[#allocation5 + $0xb04] ss:$16 sps:$4 sm:$0xff]  }
  0xca   :  { %2626 = vmatpush1.bf16.msra.mxu0 %v3871_v30  ;;  %v3949_v30 = vld [vmem:[#allocation5 + $0x900] ss:$16 sps:$4 sm:$0xff]  }
  0xcb   :  { %2667 = vmatpush1.bf16.msra.mxu1 %v3874_v31  ;;  %2627 = vmatprep.subr.bf16.mxu0 %v3879_v32  ;;  %v3952_v31 = vld [vmem:[#allocation5 + $0xb00] ss:$16 sps:$4 sm:$0xff]   ;;  %v3961_v32 = vld [vmem:[#allocation5 + $0xec] ss:$16 sps:$4 sm:$0xff]  }
  0xcc   :  { %2668 = vmatprep.subr.bf16.mxu1 %v3882_v33  ;;  %v3964_v33 = vld [vmem:[#allocation5 + $0x2ec] ss:$16 sps:$4 sm:$0xff]  }
  0xce   :  { %2628 = vmatpush1.bf16.msra.mxu0 %v3877_v34  ;;  %v4482_v34 = vcombine.low %v4464_v22, %v4464_v22  ;;  %v3968_v22 = vld [vmem:[#allocation5 + $0x2c8] ss:$16 sps:$4 sm:$0xff]  }
  0xcf   :  { %2669 = vmatpush1.bf16.msra.mxu1 %v3880_v35  ;;  %2629 = vmatprep.subr.bf16.mxu0 %v3885_v38  ;;  %v4486_v35 = vcombine.low %v4466_v23, %v4466_v23  ;;  %v3959_v38 = vld [vmem:[#allocation5 + $0xe8] ss:$16 sps:$4 sm:$0xff]   ;;  %v3976_v23 = vld [vmem:[#allocation5 + $0x2ac] ss:$16 sps:$4 sm:$0xff]  }
  0xd0   :  { %2670 = vmatprep.subr.bf16.mxu1 %v3888_v39  ;;  %v3962_v39 = vld [vmem:[#allocation5 + $0x2e8] ss:$16 sps:$4 sm:$0xff]  }
  0xd2   :  { %2630 = vmatpush1.bf16.msra.mxu0 %v3883_v40  ;;  %v3967_v40 = vld [vmem:[#allocation5 + $0xcc] ss:$16 sps:$4 sm:$0xff]  }
  0xd3   :  { %2671 = vmatpush1.bf16.msra.mxu1 %v3886_v41  ;;  %2631 = vmatprep.subr.bf16.mxu0 %v3891_v42  ;;  %v3970_v41 = vld [vmem:[#allocation5 + $0x2cc] ss:$16 sps:$4 sm:$0xff]   ;;  %v3965_v42 = vld [vmem:[#allocation5 + $0xc8] ss:$16 sps:$4 sm:$0xff]  }
  0xd4   :  { %2672 = vmatprep.subr.bf16.mxu1 %v3894_v43  ;;  %v3973_v43 = vld [vmem:[#allocation5 + $0xac] ss:$16 sps:$4 sm:$0xff]  }
  0xd6   :  { %2632 = vmatpush1.bf16.msra.mxu0 %v3889_v44  ;;  %v3971_v44 = vld [vmem:[#allocation5 + $0xa8] ss:$16 sps:$4 sm:$0xff]  }
  0xd7   :  { %2673 = vmatpush1.bf16.msra.mxu1 %v3892_v45  ;;  %2633 = vmatprep.subr.bf16.mxu0 %v3897_v46  ;;  %v3974_v45 = vld [vmem:[#allocation5 + $0x2a8] ss:$16 sps:$4 sm:$0xff]   ;;  %v3979_v46 = vld [vmem:[#allocation5 + $0x8c] ss:$16 sps:$4 sm:$0xff]  }
  0xd8   :  { %2674 = vmatprep.subr.bf16.mxu1 %v3900_v48  ;;  %v3982_v48 = vld [vmem:[#allocation5 + $0x28c] ss:$16 sps:$4 sm:$0xff]  }
  0xda   :  { %2634 = vmatpush1.bf16.msra.mxu0 %v3895_v49  ;;  %v3977_v49 = vld [vmem:[#allocation5 + $0x88] ss:$16 sps:$4 sm:$0xff]  }
  0xdb   :  { %2675 = vmatpush1.bf16.msra.mxu1 %v3898_v50  ;;  %2635 = vmatprep.subr.bf16.mxu0 %v3903_v52  ;;  %v3980_v50 = vld [vmem:[#allocation5 + $0x288] ss:$16 sps:$4 sm:$0xff]   ;;  %v3985_v52 = vld [vmem:[#allocation5 + $0x6c] ss:$16 sps:$4 sm:$0xff]  }
  0xdc   :  { %2676 = vmatprep.subr.bf16.mxu1 %v3906_v53  ;;  %v3988_v53 = vld [vmem:[#allocation5 + $0x26c] ss:$16 sps:$4 sm:$0xff]  }
  0xde   :  { %2636 = vmatpush1.bf16.msra.mxu0 %v3901_v54  ;;  %v3983_v54 = vld [vmem:[#allocation5 + $0x68] ss:$16 sps:$4 sm:$0xff]  }
  0xdf   :  { %2677 = vmatpush1.bf16.msra.mxu1 %v3904_v55  ;;  %2637 = vmatprep.subr.bf16.mxu0 %v3909_v56  ;;  %v3994_v55 = vld [vmem:[#allocation5 + $0x24c] ss:$16 sps:$4 sm:$0xff]   ;;  %v3989_v56 = vld [vmem:[#allocation5 + $0x48] ss:$16 sps:$4 sm:$0xff]  }
  0xe0   :  { %2678 = vmatprep.subr.bf16.mxu1 %v3912_v57  ;;  %v3992_v57 = vld [vmem:[#allocation5 + $0x248] ss:$16 sps:$4 sm:$0xff]  }
  0xe2   :  { %2638 = vmatpush2.bf16.msra.mxu0 %v3907_v58  ;;  %v3997_v58 = vld [vmem:[#allocation5 + $0x2c] ss:$16 sps:$4 sm:$0xff]  }
  0xe3   :  { %2679 = vmatpush2.bf16.msra.mxu1 %v3910_v59  ;;  %2639 = vmatprep.subr.bf16.mxu0 %v3915_v60  ;;  %v4000_v59 = vld [vmem:[#allocation5 + $0x22c] ss:$16 sps:$4 sm:$0xff]   ;;  %v3995_v60 = vld [vmem:[#allocation5 + $0x28] ss:$16 sps:$4 sm:$0xff]  }
  0xe4   :  { %2680 = vmatprep.subr.bf16.mxu1 %v3918_v61  ;;  %v3998_v61 = vld [vmem:[#allocation5 + $0x228] ss:$16 sps:$4 sm:$0xff]  }
  0xe6   :  { %2640 = vmatpush2.bf16.msra.mxu0 %v3913_v62  ;;  %v4003_v62 = vld [vmem:[#allocation5 + $0xc] ss:$16 sps:$4 sm:$0xff]  }
  0xe7   :  { %2681 = vmatpush2.bf16.msra.mxu1 %v3916_v63  ;;  %2641 = vmatprep.subr.bf16.mxu0 %v3921_v0  ;;  %v4006_v63 = vld [vmem:[#allocation5 + $0x20c] ss:$16 sps:$4 sm:$0xff]   ;;  %v4001_v0 = vld [vmem:[#allocation5 + $0x8] ss:$16 sps:$4 sm:$0xff]  }
  0xe8   :  { %2682 = vmatprep.subr.bf16.mxu1 %v3924_v1  ;;  %v4004_v1 = vld [vmem:[#allocation5 + $0x208] ss:$16 sps:$4 sm:$0xff]  }
  0xea   :  { %2642 = vmatpush2.bf16.msra.mxu0 %v3919_v2  ;;  %v4009_v2 = vld [vmem:[#allocation5 + $0x1ec] ss:$16 sps:$4 sm:$0xff]  }
  0xeb   :  { %2683 = vmatpush2.bf16.msra.mxu1 %v3922_v3  ;;  %2643 = vmatprep.subr.bf16.mxu0 %v3927_v4  ;;  %v4012_v3 = vld [vmem:[#allocation5 + $0x3ec] ss:$16 sps:$4 sm:$0xff]   ;;  %v4007_v4 = vld [vmem:[#allocation5 + $0x1e8] ss:$16 sps:$4 sm:$0xff]  }
  0xec   :  { %2684 = vmatprep.subr.bf16.mxu1 %v3930_v5  ;;  %v4010_v5 = vld [vmem:[#allocation5 + $0x3e8] ss:$16 sps:$4 sm:$0xff]  }
  0xee   :  { %2644 = vmatpush2.bf16.msra.mxu0 %v3925_v8  ;;  %v4015_v8 = vld [vmem:[#allocation5 + $0x1cc] ss:$16 sps:$4 sm:$0xff]  }
  0xef   :  { %2685 = vmatpush2.bf16.msra.mxu1 %v3928_v9  ;;  %2645 = vmatprep.subr.bf16.mxu0 %v3933_v10  ;;  %v4018_v9 = vld [vmem:[#allocation5 + $0x3cc] ss:$16 sps:$4 sm:$0xff]   ;;  %v4013_v10 = vld [vmem:[#allocation5 + $0x1c8] ss:$16 sps:$4 sm:$0xff]  }
  0xf0   :  { %2686 = vmatprep.subr.bf16.mxu1 %v3936_v11  ;;  %v4016_v11 = vld [vmem:[#allocation5 + $0x3c8] ss:$16 sps:$4 sm:$0xff]  }
  0xf2   :  { %2646 = vmatpush2.bf16.msra.mxu0 %v3931_v12  ;;  %v4021_v12 = vld [vmem:[#allocation5 + $0x1ac] ss:$16 sps:$4 sm:$0xff]  }
  0xf3   :  { %2687 = vmatpush2.bf16.msra.mxu1 %v3934_v13  ;;  %2647 = vmatprep.subr.bf16.mxu0 %v3939_v14  ;;  %v4024_v13 = vld [vmem:[#allocation5 + $0x3ac] ss:$16 sps:$4 sm:$0xff]   ;;  %v4019_v14 = vld [vmem:[#allocation5 + $0x1a8] ss:$16 sps:$4 sm:$0xff]  }
  0xf4   :  { %2688 = vmatprep.subr.bf16.mxu1 %v3942_v15  ;;  %v4022_v15 = vld [vmem:[#allocation5 + $0x3a8] ss:$16 sps:$4 sm:$0xff]  }
  0xf6   :  { %2648 = vmatpush2.bf16.msra.mxu0 %v3937_v18  ;;  %v4027_v18 = vld [vmem:[#allocation5 + $0x18c] ss:$16 sps:$4 sm:$0xff]  }
  0xf7   :  { %2689 = vmatpush2.bf16.msra.mxu1 %v3940_v19  ;;  %2649 = vmatprep.subr.bf16.mxu0 %v3945_v20  ;;  %v4030_v19 = vld [vmem:[#allocation5 + $0x38c] ss:$16 sps:$4 sm:$0xff]   ;;  %v4025_v20 = vld [vmem:[#allocation5 + $0x188] ss:$16 sps:$4 sm:$0xff]  }
  0xf8   :  { %2690 = vmatprep.subr.bf16.mxu1 %v3948_v21  ;;  %v4028_v21 = vld [vmem:[#allocation5 + $0x388] ss:$16 sps:$4 sm:$0xff]  }
  0xfa   :  { %2650 = vmatpush2.bf16.msra.mxu0 %v3943_v26  ;;  %v4033_v26 = vld [vmem:[#allocation5 + $0x16c] ss:$16 sps:$4 sm:$0xff]  }
  0xfb   :  { %2691 = vmatpush2.bf16.msra.mxu1 %v3946_v27  ;;  %2651 = vmatprep.subr.bf16.mxu0 %v3951_v28  ;;  %v4036_v27 = vld [vmem:[#allocation5 + $0x36c] ss:$16 sps:$4 sm:$0xff]   ;;  %v4031_v28 = vld [vmem:[#allocation5 + $0x168] ss:$16 sps:$4 sm:$0xff]  }
  0xfc   :  { %2692 = vmatprep.subr.bf16.mxu1 %v3954_v29  ;;  %v4034_v29 = vld [vmem:[#allocation5 + $0x368] ss:$16 sps:$4 sm:$0xff]  }
  0xfe   :  { %2652 = vmatpush2.bf16.msra.mxu0 %v3949_v30  ;;  %v4039_v30 = vld [vmem:[#allocation5 + $0x14c] ss:$16 sps:$4 sm:$0xff]  }
  0xff   :  { %2693 = vmatpush2.bf16.msra.mxu1 %v3952_v31  ;;  %2703 = vmatprep.subr.bf16.mxu0 %v3961_v32  ;;  %v4042_v31 = vld [vmem:[#allocation5 + $0x34c] ss:$16 sps:$4 sm:$0xff]   ;;  %v4037_v32 = vld [vmem:[#allocation5 + $0x148] ss:$16 sps:$4 sm:$0xff]  }
 0x100   :  { %2744 = vmatprep.subr.bf16.mxu1 %v3964_v33  ;;  %v4040_v33 = vld [vmem:[#allocation5 + $0x348] ss:$16 sps:$4 sm:$0xff]  }
 0x101   :  { %2654 = vmatmul.mubr.bf16.vlgmr.msra.gmra.mxu0 %v4482_v34 }
 0x102   :  { %2695 = vmatmul.mubr.bf16.vlgmr.msra.gmra.mxu1 %v4486_v35  ;;  %2704 = vmatpush1.bf16.msra.mxu0 %v3959_v38  ;;  %v4045_v38 = vld [vmem:[#allocation5 + $0x12c] ss:$16 sps:$4 sm:$0xff]  }
 0x103   :  { %2745 = vmatpush1.bf16.msra.mxu1 %v3962_v39  ;;  %2705 = vmatprep.subr.bf16.mxu0 %v3967_v40  ;;  %v475_v39 = vlaneseq  ;;  %v4048_v40 = vld [vmem:[#allocation5 + $0x32c] ss:$16 sps:$4 sm:$0xff]  }
 0x104   :  { %2746 = vmatprep.subr.bf16.mxu1 %v3970_v41  ;;  %2735 = vmatprep.mubr.bf16.mxu0 %v4430_v47  ;;  %v3986_v47 = vld [vmem:[#allocation5 + $0x268] ss:$16 sps:$4 sm:$0xff]  }
 0x105   :  { %2776 = vmatprep.mubr.bf16.mxu1 %v4432_v51  ;;  %v3991_v51 = vld [vmem:[#allocation5 + $0x4c] ss:$16 sps:$4 sm:$0xff]   ;;  %v4043_v41 = vld [vmem:[#allocation5 + $0x128] ss:$16 sps:$4 sm:$0xff]  }
 0x106   :  { %2706 = vmatpush1.bf16.msra.mxu0 %v3965_v42  ;;  %v4046_v42 = vld [vmem:[#allocation5 + $0x328] ss:$16 sps:$4 sm:$0xff]  }
 0x107   :  { %2747 = vmatpush1.bf16.msra.mxu1 %v3968_v22  ;;  %2707 = vmatprep.subr.bf16.mxu0 %v3973_v43  ;;  %v4051_v22 = vld [vmem:[#allocation5 + $0x10c] ss:$16 sps:$4 sm:$0xff]   ;;  %v4492_v43 = vshrl.u32 %v475_v39, 7 }
 0x108   :  { %2748 = vmatprep.subr.bf16.mxu1 %v3976_v23  ;;  %v4054_v23 = vld [vmem:[#allocation5 + $0x30c] ss:$16 sps:$4 sm:$0xff]  }
 0x109   :  { %v4105_v39 = vld [vmem:[#allocation5 + $0x5ec] ss:$16 sps:$4 sm:$0xff]  }
 0x10a   :  { %2708 = vmatpush1.bf16.msra.mxu0 %v3971_v44  ;;  %v4049_v44 = vld [vmem:[#allocation5 + $0x108] ss:$16 sps:$4 sm:$0xff]  }
 0x10b   :  { %2749 = vmatpush1.bf16.msra.mxu1 %v3974_v45  ;;  %2709 = vmatprep.subr.bf16.mxu0 %v3979_v46  ;;  %v4052_v45 = vld [vmem:[#allocation5 + $0x308] ss:$16 sps:$4 sm:$0xff]   ;;  %v4494_v46 = vld [vmem:[#allocation7] sm:$0xf] }
 0x10c   :  { %2750 = vmatprep.subr.bf16.mxu1 %v3982_v48  ;;  %v477_v48 = vsub.s32 0, %v4492_v43 }
 0x10e   :  { %2710 = vmatpush1.bf16.msra.mxu0 %v3977_v49  ;;  %v4057_v49 = vld [vmem:[#allocation5 + $0x4ec] ss:$16 sps:$4 sm:$0xff]  }
 0x10f   :  { %2751 = vmatpush1.bf16.msra.mxu1 %v3980_v50  ;;  %2711 = vmatprep.subr.bf16.mxu0 %v3985_v52  ;;  %v4060_v50 = vld [vmem:[#allocation5 + $0x6ec] ss:$16 sps:$4 sm:$0xff]   ;;  %v481_v52 = vsub.s32 1, %v4492_v43 }
 0x110   :  { %2752 = vmatprep.subr.bf16.mxu1 %v3988_v53  ;;  %v4055_v53 = vld [vmem:[#allocation5 + $0x4e8] ss:$16 sps:$4 sm:$0xff]  }
 0x112   :  { %2712 = vmatpush1.bf16.msra.mxu0 %v3983_v54  ;;  %v478_v54 = vrot.slane %v4494_v46, %v477_v48  ;;  %v4117_v48 = vld [vmem:[#allocation5 + $0x5ac] ss:$16 sps:$4 sm:$0xff]  }
 0x113   :  { %2753 = vmatpush1.bf16.msra.mxu1 %v3986_v47  ;;  %2713 = vmatprep.subr.bf16.mxu0 %v3991_v51  ;;  %v4058_v47 = vld [vmem:[#allocation5 + $0x6e8] ss:$16 sps:$4 sm:$0xff]   ;;  %v4063_v51 = vld [vmem:[#allocation5 + $0x4cc] ss:$16 sps:$4 sm:$0xff]  }
 0x114   :  { %2754 = vmatprep.subr.bf16.mxu1 %v3994_v55  ;;  %v4066_v55 = vld [vmem:[#allocation5 + $0x6cc] ss:$16 sps:$4 sm:$0xff]  }
 0x116   :  { %2714 = vmatpush1.bf16.msra.mxu0 %v3989_v56  ;;  %v482_v56 = vrot.slane %v4494_v46, %v481_v52  ;;  %v4118_v52 = vld [vmem:[#allocation5 + $0x7a8] ss:$16 sps:$4 sm:$0xff]  }
 0x117   :  { %2755 = vmatpush1.bf16.msra.mxu1 %v3992_v57  ;;  %2715 = vmatprep.subr.bf16.mxu0 %v3997_v58 }
 0x118   :  { %2756 = vmatprep.subr.bf16.mxu1 %v4000_v59 }
 0x11a   :  { %2716 = vmatpush1.bf16.msra.mxu0 %v3995_v60  ;;  %v4061_v60 = vld [vmem:[#allocation5 + $0x4c8] ss:$16 sps:$4 sm:$0xff]  }
 0x11b   :  { %2757 = vmatpush1.bf16.msra.mxu1 %v3998_v61  ;;  %2717 = vmatprep.subr.bf16.mxu0 %v4003_v62  ;;  %v4064_v61 = vld [vmem:[#allocation5 + $0x6c8] ss:$16 sps:$4 sm:$0xff]  }
 0x11c   :  { %2758 = vmatprep.subr.bf16.mxu1 %v4006_v63 }
 0x11e   :  { %2718 = vmatpush1.bf16.msra.mxu0 %v4001_v0  ;;  %v4069_v0 = vld [vmem:[#allocation5 + $0x4ac] ss:$16 sps:$4 sm:$0xff]  }
 0x11f   :  { %2759 = vmatpush1.bf16.msra.mxu1 %v4004_v1  ;;  %2719 = vmatprep.subr.bf16.mxu0 %v4009_v2  ;;  %v4072_v1 = vld [vmem:[#allocation5 + $0x6ac] ss:$16 sps:$4 sm:$0xff]  }
 0x120   :  { %2760 = vmatprep.subr.bf16.mxu1 %v4012_v3 }
 0x122   :  { %2720 = vmatpush2.bf16.msra.mxu0 %v4007_v4 }
 0x123   :  { %2761 = vmatpush2.bf16.msra.mxu1 %v4010_v5  ;;  %2721 = vmatprep.subr.bf16.mxu0 %v4015_v8  ;;  %v4067_v5 = vld [vmem:[#allocation5 + $0x4a8] ss:$16 sps:$4 sm:$0xff]  }
 0x124   :  { %2762 = vmatprep.subr.bf16.mxu1 %v4018_v9  ;;  %v4070_v8 = vld [vmem:[#allocation5 + $0x6a8] ss:$16 sps:$4 sm:$0xff]  }
 0x126   :  { %2722 = vmatpush2.bf16.msra.mxu0 %v4013_v10 }
 0x127   :  { %2763 = vmatpush2.bf16.msra.mxu1 %v4016_v11  ;;  %2723 = vmatprep.subr.bf16.mxu0 %v4021_v12  ;;  %v4075_v11 = vld [vmem:[#allocation5 + $0x48c] ss:$16 sps:$4 sm:$0xff]  }
 0x128   :  { %2764 = vmatprep.subr.bf16.mxu1 %v4024_v13  ;;  %v4078_v12 = vld [vmem:[#allocation5 + $0x68c] ss:$16 sps:$4 sm:$0xff]   ;;  %v4073_v13 = vld [vmem:[#allocation5 + $0x488] ss:$16 sps:$4 sm:$0xff]  }
 0x12a   :  { %2724 = vmatpush2.bf16.msra.mxu0 %v4019_v14  ;;  %v4084_v14 = vld [vmem:[#allocation5 + $0x66c] ss:$16 sps:$4 sm:$0xff]  }
 0x12b   :  { %2765 = vmatpush2.bf16.msra.mxu1 %v4022_v15  ;;  %2725 = vmatprep.subr.bf16.mxu0 %v4027_v18  ;;  %v4079_v15 = vld [vmem:[#allocation5 + $0x468] ss:$16 sps:$4 sm:$0xff]  }
 0x12c   :  { %2766 = vmatprep.subr.bf16.mxu1 %v4030_v19  ;;  %v4082_v18 = vld [vmem:[#allocation5 + $0x668] ss:$16 sps:$4 sm:$0xff]   ;;  %v4087_v19 = vld [vmem:[#allocation5 + $0x44c] ss:$16 sps:$4 sm:$0xff]  }
 0x12e   :  { %2726 = vmatpush2.bf16.msra.mxu0 %v4025_v20  ;;  %v4090_v20 = vld [vmem:[#allocation5 + $0x64c] ss:$16 sps:$4 sm:$0xff]  }
 0x12f   :  { %2767 = vmatpush2.bf16.msra.mxu1 %v4028_v21  ;;  %2727 = vmatprep.subr.bf16.mxu0 %v4033_v26  ;;  %v4085_v21 = vld [vmem:[#allocation5 + $0x448] ss:$16 sps:$4 sm:$0xff]  }
 0x130   :  { %2768 = vmatprep.subr.bf16.mxu1 %v4036_v27  ;;  %v4088_v26 = vld [vmem:[#allocation5 + $0x648] ss:$16 sps:$4 sm:$0xff]   ;;  %v4093_v27 = vld [vmem:[#allocation5 + $0x42c] ss:$16 sps:$4 sm:$0xff]  }
 0x132   :  { %2728 = vmatpush2.bf16.msra.mxu0 %v4031_v28  ;;  %v4096_v28 = vld [vmem:[#allocation5 + $0x62c] ss:$16 sps:$4 sm:$0xff]  }
 0x133   :  { %2769 = vmatpush2.bf16.msra.mxu1 %v4034_v29  ;;  %2729 = vmatprep.subr.bf16.mxu0 %v4039_v30  ;;  %v4091_v29 = vld [vmem:[#allocation5 + $0x428] ss:$16 sps:$4 sm:$0xff]  }
 0x134   :  { %2770 = vmatprep.subr.bf16.mxu1 %v4042_v31  ;;  %v4094_v30 = vld [vmem:[#allocation5 + $0x628] ss:$16 sps:$4 sm:$0xff]   ;;  %v4099_v31 = vld [vmem:[#allocation5 + $0x40c] ss:$16 sps:$4 sm:$0xff]  }
 0x136   :  { %2730 = vmatpush2.bf16.msra.mxu0 %v4037_v32  ;;  %v4102_v32 = vld [vmem:[#allocation5 + $0x60c] ss:$16 sps:$4 sm:$0xff]  }
 0x137   :  { %2771 = vmatpush2.bf16.msra.mxu1 %v4040_v33  ;;  %2731 = vmatprep.subr.bf16.mxu0 %v4045_v38  ;;  %v4097_v33 = vld [vmem:[#allocation5 + $0x408] ss:$16 sps:$4 sm:$0xff]  }
 0x138   :  { %2772 = vmatprep.subr.bf16.mxu1 %v4048_v40  ;;  %v4100_v38 = vld [vmem:[#allocation5 + $0x608] ss:$16 sps:$4 sm:$0xff]   ;;  %v4108_v40 = vld [vmem:[#allocation5 + $0x7ec] ss:$16 sps:$4 sm:$0xff]  }
 0x13a   :  { %2732 = vmatpush2.bf16.msra.mxu0 %v4043_v41  ;;  %v4103_v41 = vld [vmem:[#allocation5 + $0x5e8] ss:$16 sps:$4 sm:$0xff]  }
 0x13b   :  { %2773 = vmatpush2.bf16.msra.mxu1 %v4046_v42  ;;  %2733 = vmatprep.subr.bf16.mxu0 %v4051_v22  ;;  %v4106_v42 = vld [vmem:[#allocation5 + $0x7e8] ss:$16 sps:$4 sm:$0xff]   ;;  %v4111_v22 = vld [vmem:[#allocation5 + $0x5cc] ss:$16 sps:$4 sm:$0xff]  }
 0x13c   :  { %2774 = vmatprep.subr.bf16.mxu1 %v4054_v23  ;;  %v4114_v23 = vld [vmem:[#allocation5 + $0x7cc] ss:$16 sps:$4 sm:$0xff]  }
 0x13e   :  { %2734 = vmatpush2.bf16.msra.mxu0 %v4049_v44  ;;  %v4109_v44 = vld [vmem:[#allocation5 + $0x5c8] ss:$16 sps:$4 sm:$0xff]  }
 0x13f   :  { %2775 = vmatpush2.bf16.msra.mxu1 %v4052_v45  ;;  %2785 = vmatprep.subr.bf16.mxu0 %v4057_v49  ;;  %v4112_v45 = vld [vmem:[#allocation5 + $0x7c8] ss:$16 sps:$4 sm:$0xff]   ;;  %v4120_v49 = vld [vmem:[#allocation5 + $0x7ac] ss:$16 sps:$4 sm:$0xff]  }
 0x140   :  { %2826 = vmatprep.subr.bf16.mxu1 %v4060_v50  ;;  %v4115_v50 = vld [vmem:[#allocation5 + $0x5a8] ss:$16 sps:$4 sm:$0xff]  }
 0x141   :  { %v2491_v57 = vpop.f32.mrf.mxu0  ;;  %2736 = vmatmul.mubr.bf16.vlgmr.msra.gmra.mxu0 %v4436_v6 }
 0x142   :  { %v2532_v58 = vpop.f32.mrf.mxu1  ;;  %2777 = vmatmul.mubr.bf16.vlgmr.msra.gmra.mxu1 %v4438_v7  ;;  %v2492_v59 = vadd.f32 %v2491_v57, %v478_v54  ;;  %2786 = vmatpush1.bf16.msra.mxu0 %v4055_v53  ;;  %v4123_v53 = vld [vmem:[#allocation5 + $0x58c] ss:$16 sps:$4 sm:$0xff]   ;;  %v4127_v57 = vld [vmem:[#allocation5 + $0x568] ss:$16 sps:$4 sm:$0xff]  }
 0x143   :  { %2827 = vmatpush1.bf16.msra.mxu1 %v4058_v47  ;;  %v2493_v62 = vpop.f32.mrf.mxu0  ;;  %2787 = vmatprep.subr.bf16.mxu0 %v4063_v51  ;;  %v4126_v54 = vld [vmem:[#allocation5 + $0x78c] ss:$16 sps:$4 sm:$0xff]   ;;  %v4121_v47 = vld [vmem:[#allocation5 + $0x588] ss:$16 sps:$4 sm:$0xff]  }
 0x144   :  { %v2534_v63 = vpop.f32.mrf.mxu1  ;;  %2828 = vmatprep.subr.bf16.mxu1 %v4066_v55  ;;  %v4502_v2 = vadd.f32 %v2532_v58, %v2492_v59  ;;  %v2494_v3 = vadd.f32 %v2493_v62, %v482_v56  ;;  %2817 = vmatprep.mubr.bf16.mxu0 %v4448_v36  ;;  %v4076_v36 = vld [vmem:[#allocation5 + $0x688] ss:$16 sps:$4 sm:$0xff]   ;;  %v4129_v55 = vld [vmem:[#allocation5 + $0x56c] ss:$16 sps:$4 sm:$0xff]  }
 0x145   :  { %2858 = vmatprep.mubr.bf16.mxu1 %v4452_v37  ;;  %v2495_v6 = vpop.f32.mrf.mxu0  ;;  %v4081_v37 = vld [vmem:[#allocation5 + $0x46c] ss:$16 sps:$4 sm:$0xff]   ;;  %v4124_v51 = vld [vmem:[#allocation5 + $0x788] ss:$16 sps:$4 sm:$0xff]  }
 0x146   :  { %v2536_v7 = vpop.f32.mrf.mxu1  ;;  %v4506_v4 = vadd.f32 %v2534_v63, %v2494_v3  ;;  %2788 = vmatpush1.bf16.msra.mxu0 %v4061_v60  ;;  %v4132_v56 = vld [vmem:[#allocation5 + $0x76c] ss:$16 sps:$4 sm:$0xff]   ;;  %v4130_v58 = vld [vmem:[#allocation5 + $0x768] ss:$16 sps:$4 sm:$0xff]  }
 0x147   :  { %2829 = vmatpush1.bf16.msra.mxu1 %v4064_v61  ;;  %v2496_v9 = vpop.f32.mrf.mxu0  ;;  %2789 = vmatprep.subr.bf16.mxu0 %v4069_v0  ;;  %v4135_v59 = vld [vmem:[#allocation5 + $0x54c] ss:$16 sps:$4 sm:$0xff]   ;;  %v4133_v61 = vld [vmem:[#allocation5 + $0x548] ss:$16 sps:$4 sm:$0xff]  }
 0x148   :  { %v2537_v10 = vpop.f32.mrf.mxu1  ;;  %2830 = vmatprep.subr.bf16.mxu1 %v4072_v1  ;;  %v4138_v60 = vld [vmem:[#allocation5 + $0x74c] ss:$16 sps:$4 sm:$0xff]   ;;  %v4136_v62 = vld [vmem:[#allocation5 + $0x748] ss:$16 sps:$4 sm:$0xff]  }
 0x149   :  { %v4141_v63 = vld [vmem:[#allocation5 + $0x52c] ss:$16 sps:$4 sm:$0xff]   ;;  %v4139_v1 = vld [vmem:[#allocation5 + $0x528] ss:$16 sps:$4 sm:$0xff]  }
 0x14a   :  { %2790 = vmatpush1.bf16.msra.mxu0 %v4067_v5  ;;  %v4144_v0 = vld [vmem:[#allocation5 + $0x72c] ss:$16 sps:$4 sm:$0xff]   ;;  %v4142_v3 = vld [vmem:[#allocation5 + $0x728] ss:$16 sps:$4 sm:$0xff]  }
 0x14b   :  { %2831 = vmatpush1.bf16.msra.mxu1 %v4070_v8  ;;  %2791 = vmatprep.subr.bf16.mxu0 %v4075_v11  ;;  %v4147_v6 = vld [vmem:[#allocation5 + $0x50c] ss:$16 sps:$4 sm:$0xff]   ;;  %v4145_v5 = vld [vmem:[#allocation5 + $0x508] ss:$16 sps:$4 sm:$0xff]  }
 0x14c   :  { %2832 = vmatprep.subr.bf16.mxu1 %v4078_v12  ;;  %v4150_v7 = vld [vmem:[#allocation5 + $0x70c] ss:$16 sps:$4 sm:$0xff]   ;;  %v4148_v8 = vld [vmem:[#allocation5 + $0x708] ss:$16 sps:$4 sm:$0xff]  }
 0x14d   :  { %v4153_v9 = vld [vmem:[#allocation5 + $0x8ec] ss:$16 sps:$4 sm:$0xff]   ;;  %v4151_v11 = vld [vmem:[#allocation5 + $0x8e8] ss:$16 sps:$4 sm:$0xff]  }
 0x14e   :  { %2792 = vmatpush1.bf16.msra.mxu0 %v4073_v13  ;;  %v4156_v10 = vld [vmem:[#allocation5 + $0xaec] ss:$16 sps:$4 sm:$0xff]   ;;  %v4154_v12 = vld [vmem:[#allocation5 + $0xae8] ss:$16 sps:$4 sm:$0xff]  }
 0x14f   :  { %2833 = vmatpush1.bf16.msra.mxu1 %v4076_v36  ;;  %2793 = vmatprep.subr.bf16.mxu0 %v4081_v37  ;;  %v4159_v13 = vld [vmem:[#allocation5 + $0x8cc] ss:$16 sps:$4 sm:$0xff]  }
 0x150   :  { %2834 = vmatprep.subr.bf16.mxu1 %v4084_v14  ;;  %v4162_v36 = vld [vmem:[#allocation5 + $0xacc] ss:$16 sps:$4 sm:$0xff]  }
 0x152   :  { %2794 = vmatpush1.bf16.msra.mxu0 %v4079_v15 }
 0x153   :  { %2835 = vmatpush1.bf16.msra.mxu1 %v4082_v18  ;;  %2795 = vmatprep.subr.bf16.mxu0 %v4087_v19  ;;  %v4157_v18 = vld [vmem:[#allocation5 + $0x8c8] ss:$16 sps:$4 sm:$0xff]  }
 0x154   :  { %2836 = vmatprep.subr.bf16.mxu1 %v4090_v20  ;;  %v4160_v19 = vld [vmem:[#allocation5 + $0xac8] ss:$16 sps:$4 sm:$0xff]  }
 0x156   :  { %2796 = vmatpush1.bf16.msra.mxu0 %v4085_v21 }
 0x157   :  { %2837 = vmatpush1.bf16.msra.mxu1 %v4088_v26  ;;  %2797 = vmatprep.subr.bf16.mxu0 %v4093_v27  ;;  %v4165_v26 = vld [vmem:[#allocation5 + $0x8ac] ss:$16 sps:$4 sm:$0xff]  }
 0x158   :  { %2838 = vmatprep.subr.bf16.mxu1 %v4096_v28  ;;  %v4168_v27 = vld [vmem:[#allocation5 + $0xaac] ss:$16 sps:$4 sm:$0xff]  }
 0x15a   :  { %2798 = vmatpush1.bf16.msra.mxu0 %v4091_v29  ;;  %v4166_v29 = vld [vmem:[#allocation5 + $0xaa8] ss:$16 sps:$4 sm:$0xff]  }
 0x15b   :  { %2839 = vmatpush1.bf16.msra.mxu1 %v4094_v30  ;;  %2799 = vmatprep.subr.bf16.mxu0 %v4099_v31 }
 0x15c   :  { %2840 = vmatprep.subr.bf16.mxu1 %v4102_v32  ;;  %v4171_v32 = vld [vmem:[#allocation5 + $0x88c] ss:$16 sps:$4 sm:$0xff]  }
 0x15e   :  { %2800 = vmatpush1.bf16.msra.mxu0 %v4097_v33  ;;  %v4174_v33 = vld [vmem:[#allocation5 + $0xa8c] ss:$16 sps:$4 sm:$0xff]  }
 0x15f   :  { %2841 = vmatpush1.bf16.msra.mxu1 %v4100_v38  ;;  %2801 = vmatprep.subr.bf16.mxu0 %v4105_v39  ;;  %v4169_v38 = vld [vmem:[#allocation5 + $0x888] ss:$16 sps:$4 sm:$0xff]  }
 0x160   :  { %2842 = vmatprep.subr.bf16.mxu1 %v4108_v40  ;;  %v4172_v39 = vld [vmem:[#allocation5 + $0xa88] ss:$16 sps:$4 sm:$0xff]  }
 0x161   :  { %v4175_v40 = vld [vmem:[#allocation5 + $0x868] ss:$16 sps:$4 sm:$0xff]  }
 0x162   :  { %2802 = vmatpush2.bf16.msra.mxu0 %v4103_v41  ;;  %v4178_v41 = vld [vmem:[#allocation5 + $0xa68] ss:$16 sps:$4 sm:$0xff]  }
 0x163   :  { %2843 = vmatpush2.bf16.msra.mxu1 %v4106_v42  ;;  %2803 = vmatprep.subr.bf16.mxu0 %v4111_v22  ;;  %v4183_v42 = vld [vmem:[#allocation5 + $0x84c] ss:$16 sps:$4 sm:$0xff]  }
 0x164   :  { %2844 = vmatprep.subr.bf16.mxu1 %v4114_v23  ;;  %v4186_v22 = vld [vmem:[#allocation5 + $0xa4c] ss:$16 sps:$4 sm:$0xff]   ;;  %v4181_v23 = vld [vmem:[#allocation5 + $0x848] ss:$16 sps:$4 sm:$0xff]  }
 0x166   :  { %2804 = vmatpush2.bf16.msra.mxu0 %v4109_v44  ;;  %v4184_v44 = vld [vmem:[#allocation5 + $0xa48] ss:$16 sps:$4 sm:$0xff]  }
 0x167   :  { %2845 = vmatpush2.bf16.msra.mxu1 %v4112_v45  ;;  %2805 = vmatprep.subr.bf16.mxu0 %v4117_v48  ;;  %v4189_v45 = vld [vmem:[#allocation5 + $0x82c] ss:$16 sps:$4 sm:$0xff]  }
 0x168   :  { %2846 = vmatprep.subr.bf16.mxu1 %v4120_v49  ;;  %v4192_v48 = vld [vmem:[#allocation5 + $0xa2c] ss:$16 sps:$4 sm:$0xff]   ;;  %v4187_v49 = vld [vmem:[#allocation5 + $0x828] ss:$16 sps:$4 sm:$0xff]  }
 0x16a   :  { %2806 = vmatpush2.bf16.msra.mxu0 %v4115_v50  ;;  %v4190_v50 = vld [vmem:[#allocation5 + $0xa28] ss:$16 sps:$4 sm:$0xff]  }
 0x16b   :  { %2847 = vmatpush2.bf16.msra.mxu1 %v4118_v52  ;;  %2807 = vmatprep.subr.bf16.mxu0 %v4123_v53  ;;  %v4195_v52 = vld [vmem:[#allocation5 + $0x80c] ss:$16 sps:$4 sm:$0xff]  }
 0x16c   :  { %2848 = vmatprep.subr.bf16.mxu1 %v4126_v54  ;;  %v4198_v53 = vld [vmem:[#allocation5 + $0xa0c] ss:$16 sps:$4 sm:$0xff]   ;;  %v4193_v54 = vld [vmem:[#allocation5 + $0x808] ss:$16 sps:$4 sm:$0xff]  }
 0x16e   :  { %2808 = vmatpush2.bf16.msra.mxu0 %v4121_v47  ;;  %v4196_v47 = vld [vmem:[#allocation5 + $0xa08] ss:$16 sps:$4 sm:$0xff]  }
 0x16f   :  { %2849 = vmatpush2.bf16.msra.mxu1 %v4124_v51  ;;  %2809 = vmatprep.subr.bf16.mxu0 %v4129_v55  ;;  %v4201_v51 = vld [vmem:[#allocation5 + $0x9ec] ss:$16 sps:$4 sm:$0xff]  }
 0x170   :  { %2850 = vmatprep.subr.bf16.mxu1 %v4132_v56  ;;  %v4204_v55 = vld [vmem:[#allocation5 + $0xbec] ss:$16 sps:$4 sm:$0xff]   ;;  %v4199_v56 = vld [vmem:[#allocation5 + $0x9e8] ss:$16 sps:$4 sm:$0xff]  }
 0x172   :  { %2810 = vmatpush2.bf16.msra.mxu0 %v4127_v57  ;;  %v4202_v57 = vld [vmem:[#allocation5 + $0xbe8] ss:$16 sps:$4 sm:$0xff]  }
 0x173   :  { %2851 = vmatpush2.bf16.msra.mxu1 %v4130_v58  ;;  %2811 = vmatprep.subr.bf16.mxu0 %v4135_v59  ;;  %v4207_v58 = vld [vmem:[#allocation5 + $0x9cc] ss:$16 sps:$4 sm:$0xff]  }
 0x174   :  { %2852 = vmatprep.subr.bf16.mxu1 %v4138_v60  ;;  %v4210_v59 = vld [vmem:[#allocation5 + $0xbcc] ss:$16 sps:$4 sm:$0xff]   ;;  %v4205_v60 = vld [vmem:[#allocation5 + $0x9c8] ss:$16 sps:$4 sm:$0xff]  }
 0x176   :  { %2812 = vmatpush2.bf16.msra.mxu0 %v4133_v61  ;;  %v4208_v61 = vld [vmem:[#allocation5 + $0xbc8] ss:$16 sps:$4 sm:$0xff]  }
 0x177   :  { %2853 = vmatpush2.bf16.msra.mxu1 %v4136_v62  ;;  %2813 = vmatprep.subr.bf16.mxu0 %v4141_v63  ;;  %v4213_v62 = vld [vmem:[#allocation5 + $0x9ac] ss:$16 sps:$4 sm:$0xff]  }
 0x178   :  { %2854 = vmatprep.subr.bf16.mxu1 %v4144_v0  ;;  %v4216_v63 = vld [vmem:[#allocation5 + $0xbac] ss:$16 sps:$4 sm:$0xff]   ;;  %v4211_v0 = vld [vmem:[#allocation5 + $0x9a8] ss:$16 sps:$4 sm:$0xff]  }
 0x17a   :  { %2814 = vmatpush2.bf16.msra.mxu0 %v4139_v1  ;;  %v4214_v1 = vld [vmem:[#allocation5 + $0xba8] ss:$16 sps:$4 sm:$0xff]  }
 0x17b   :  { %2855 = vmatpush2.bf16.msra.mxu1 %v4142_v3  ;;  %2815 = vmatprep.subr.bf16.mxu0 %v4147_v6  ;;  %v4219_v3 = vld [vmem:[#allocation5 + $0x98c] ss:$16 sps:$4 sm:$0xff]  }
 0x17c   :  { %2856 = vmatprep.subr.bf16.mxu1 %v4150_v7  ;;  %v4222_v6 = vld [vmem:[#allocation5 + $0xb8c] ss:$16 sps:$4 sm:$0xff]   ;;  %v4217_v7 = vld [vmem:[#allocation5 + $0x988] ss:$16 sps:$4 sm:$0xff]  }
 0x17e   :  { %2816 = vmatpush2.bf16.msra.mxu0 %v4145_v5  ;;  %v4220_v5 = vld [vmem:[#allocation5 + $0xb88] ss:$16 sps:$4 sm:$0xff]  }
 0x17f   :  { %2857 = vmatpush2.bf16.msra.mxu1 %v4148_v8  ;;  %2867 = vmatprep.subr.bf16.mxu0 %v4153_v9  ;;  %v4225_v8 = vld [vmem:[#allocation5 + $0x96c] ss:$16 sps:$4 sm:$0xff]  }
 0x180   :  { %2908 = vmatprep.subr.bf16.mxu1 %v4156_v10  ;;  %v4228_v9 = vld [vmem:[#allocation5 + $0xb6c] ss:$16 sps:$4 sm:$0xff]   ;;  %v4223_v10 = vld [vmem:[#allocation5 + $0x968] ss:$16 sps:$4 sm:$0xff]  }
 0x181   :  { %v2573_v37 = vpop.f32.mrf.mxu0  ;;  %2818 = vmatmul.mubr.bf16.vlgmr.msra.gmra.mxu0 %v4458_v16 }
 0x182   :  { %v2614_v14 = vpop.f32.mrf.mxu1  ;;  %2859 = vmatmul.mubr.bf16.vlgmr.msra.gmra.mxu1 %v4462_v17  ;;  %v2574_v15 = vadd.f32 %v2573_v37, %v4502_v2  ;;  %2868 = vmatpush1.bf16.msra.mxu0 %v4151_v11  ;;  %v4163_v2 = vld [vmem:[#allocation5 + $0x8a8] ss:$16 sps:$4 sm:$0xff]  }
 0x183   :  { %2909 = vmatpush1.bf16.msra.mxu1 %v4154_v12  ;;  %v4511_v20 = vpop.f32.mrf.mxu0  ;;  %2869 = vmatprep.subr.bf16.mxu0 %v4159_v13  ;;  %v4226_v11 = vld [vmem:[#allocation5 + $0xb68] ss:$16 sps:$4 sm:$0xff]   ;;  %v4231_v12 = vld [vmem:[#allocation5 + $0x94c] ss:$16 sps:$4 sm:$0xff]  }
 0x184   :  { %v4513_v21 = vpop.f32.mrf.mxu1  ;;  %2910 = vmatprep.subr.bf16.mxu1 %v4162_v36  ;;  %v4515_v28 = vadd.f32 %v2614_v14, %v2574_v15  ;;  %2899 = vmatprep.mubr.bf16.mxu0 %v4470_v24  ;;  %v4177_v24 = vld [vmem:[#allocation5 + $0x86c] ss:$16 sps:$4 sm:$0xff]   ;;  %v4229_v36 = vld [vmem:[#allocation5 + $0x948] ss:$16 sps:$4 sm:$0xff]  }
 0x185   :  { %2940 = vmatprep.mubr.bf16.mxu1 %v4474_v25  ;;  %v2577_v16 = vpop.f32.mrf.mxu0  ;;  %v4180_v25 = vld [vmem:[#allocation5 + $0xa6c] ss:$16 sps:$4 sm:$0xff]   ;;  %v4232_v37 = vld [vmem:[#allocation5 + $0xb48] ss:$16 sps:$4 sm:$0xff]  }
 0x186   :  { %v2618_v17 = vpop.f32.mrf.mxu1  ;;  %2870 = vmatpush1.bf16.msra.mxu0 %v4157_v18  ;;  %v4234_v13 = vld [vmem:[#allocation5 + $0xb4c] ss:$16 sps:$4 sm:$0xff]   ;;  %v4235_v18 = vld [vmem:[#allocation5 + $0x928] ss:$16 sps:$4 sm:$0xff]  }
 0x187   :  { %2911 = vmatpush1.bf16.msra.mxu1 %v4160_v19  ;;  %v2578_v30 = vpop.f32.mrf.mxu0  ;;  %2871 = vmatprep.subr.bf16.mxu0 %v4165_v26  ;;  %v4237_v14 = vld [vmem:[#allocation5 + $0x92c] ss:$16 sps:$4 sm:$0xff]   ;;  %v4238_v19 = vld [vmem:[#allocation5 + $0xb28] ss:$16 sps:$4 sm:$0xff]  }
 0x188   :  { %v2619_v31 = vpop.f32.mrf.mxu1  ;;  %2912 = vmatprep.subr.bf16.mxu1 %v4168_v27  ;;  %v4240_v15 = vld [vmem:[#allocation5 + $0xb2c] ss:$16 sps:$4 sm:$0xff]   ;;  %v4241_v16 = vld [vmem:[#allocation5 + $0x908] ss:$16 sps:$4 sm:$0xff]  }
 0x189   :  { %v4243_v26 = vld [vmem:[#allocation5 + $0x90c] ss:$16 sps:$4 sm:$0xff]   ;;  %v4244_v17 = vld [vmem:[#allocation5 + $0xb08] ss:$16 sps:$4 sm:$0xff]  }
 0x18a   :  { %2872 = vmatpush1.bf16.msra.mxu0 %v4163_v2  ;;  %v4246_v27 = vld [vmem:[#allocation5 + $0xb0c] ss:$16 sps:$4 sm:$0xff]   ;;  %v2983_v31 = vld [vmem:[#allocation8 + $0xf0] sm:$0xff] }
 0x18b   :  { %2913 = vmatpush1.bf16.msra.mxu1 %v4166_v29  ;;  %2873 = vmatprep.subr.bf16.mxu0 %v4171_v32  ;;  %v2984_v2 = vld [vmem:[#allocation8 + $0xf8] sm:$0xff]  ;;  %v2576_v29 = vadd.f32 %v4511_v20, %v4506_v4  ;;  %v2966_v20 = vld [vmem:[#allocation8 + $0x68] sm:$0xff] }
 0x18c   :  { %2914 = vmatprep.subr.bf16.mxu1 %v4174_v33  ;;  %v2968_v30 = vld [vmem:[#allocation8 + $0x78] sm:$0xff] }
 0x18e   :  { %2874 = vmatpush1.bf16.msra.mxu0 %v4169_v38  ;;  %v2967_v38 = vld [vmem:[#allocation8 + $0x70] sm:$0xff] }
 0x18f   :  { %2915 = vmatpush1.bf16.msra.mxu1 %v4172_v39  ;;  %2875 = vmatprep.subr.bf16.mxu0 %v4177_v24  ;;  %v2617_v39 = vadd.f32 %v4513_v21, %v2576_v29  ;;  %v2982_v24 = vld [vmem:[#allocation8 + $0xe8] sm:$0xff]  ;;  %v2964_v21 = vld [vmem:[#allocation8 + $0x58] sm:$0xff] }
 0x190   :  { %2916 = vmatprep.subr.bf16.mxu1 %v4180_v25  ;;  %v2970_v29 = vld [vmem:[#allocation8 + $0x88] sm:$0xff] }
 0x192   :  { %2876 = vmatpush1.bf16.msra.mxu0 %v4175_v40 }
 0x193   :  { %2917 = vmatpush1.bf16.msra.mxu1 %v4178_v41  ;;  %2877 = vmatprep.subr.bf16.mxu0 %v4183_v42  ;;  %v2981_v41 = vld [vmem:[#allocation8 + $0xe0] sm:$0xff] }
 0x194   :  { %2918 = vmatprep.subr.bf16.mxu1 %v4186_v22 }
 0x196   :  { %2878 = vmatpush1.bf16.msra.mxu0 %v4181_v23  ;;  %v2965_v23 = vld [vmem:[#allocation8 + $0x60] sm:$0xff] }
 0x197   :  { %2919 = vmatpush1.bf16.msra.mxu1 %v4184_v44  ;;  %2879 = vmatprep.subr.bf16.mxu0 %v4189_v45 }
 0x198   :  { %2920 = vmatprep.subr.bf16.mxu1 %v4192_v48  ;;  %v3016_v48 = vld [vmem:[#allocation8 + $0x1f8] sm:$0xff] }
 0x19a   :  { %2880 = vmatpush1.bf16.msra.mxu0 %v4187_v49  ;;  %v3000_v49 = vld [vmem:[#allocation8 + $0x178] sm:$0xff] }
 0x19b   :  { %2921 = vmatpush1.bf16.msra.mxu1 %v4190_v50  ;;  %2881 = vmatprep.subr.bf16.mxu0 %v4195_v52  ;;  %v2979_v52 = vld [vmem:[#allocation8 + $0xd0] sm:$0xff] }
 0x19c   :  { %2922 = vmatprep.subr.bf16.mxu1 %v4198_v53  ;;  %v3015_v53 = vld [vmem:[#allocation8 + $0x1f0] sm:$0xff] }
 0x19e   :  { %2882 = vmatpush1.bf16.msra.mxu0 %v4193_v54  ;;  %v2963_v54 = vld [vmem:[#allocation8 + $0x50] sm:$0xff] }
 0x19f   :  { %2923 = vmatpush1.bf16.msra.mxu1 %v4196_v47  ;;  %2883 = vmatprep.subr.bf16.mxu0 %v4201_v51  ;;  %v2999_v47 = vld [vmem:[#allocation8 + $0x170] sm:$0xff]  ;;  %v2978_v51 = vld [vmem:[#allocation8 + $0xc8] sm:$0xff] }
 0x1a0   :  { %2924 = vmatprep.subr.bf16.mxu1 %v4204_v55  ;;  %v3014_v55 = vld [vmem:[#allocation8 + $0x1e8] sm:$0xff] }
 0x1a2   :  { %2884 = vmatpush2.bf16.msra.mxu0 %v4199_v56  ;;  %v2962_v56 = vld [vmem:[#allocation8 + $0x48] sm:$0xff] }
 0x1a3   :  { %2925 = vmatpush2.bf16.msra.mxu1 %v4202_v57  ;;  %2885 = vmatprep.subr.bf16.mxu0 %v4207_v58  ;;  %v2998_v57 = vld [vmem:[#allocation8 + $0x168] sm:$0xff]  ;;  %v2977_v58 = vld [vmem:[#allocation8 + $0xc0] sm:$0xff] }
 0x1a4   :  { %2926 = vmatprep.subr.bf16.mxu1 %v4210_v59  ;;  %v3013_v59 = vld [vmem:[#allocation8 + $0x1e0] sm:$0xff] }
 0x1a6   :  { %2886 = vmatpush2.bf16.msra.mxu0 %v4205_v60  ;;  %v2961_v60 = vld [vmem:[#allocation8 + $0x40] sm:$0xff] }
 0x1a7   :  { %2927 = vmatpush2.bf16.msra.mxu1 %v4208_v61  ;;  %2887 = vmatprep.subr.bf16.mxu0 %v4213_v62  ;;  %v2997_v61 = vld [vmem:[#allocation8 + $0x160] sm:$0xff]  ;;  %v2976_v62 = vld [vmem:[#allocation8 + $0xb8] sm:$0xff] }
 0x1a8   :  { %2928 = vmatprep.subr.bf16.mxu1 %v4216_v63  ;;  %v3012_v63 = vld [vmem:[#allocation8 + $0x1d8] sm:$0xff] }
 0x1aa   :  { %2888 = vmatpush2.bf16.msra.mxu0 %v4211_v0  ;;  %v2960_v0 = vld [vmem:[#allocation8 + $0x38] sm:$0xff] }
 0x1ab   :  { %2929 = vmatpush2.bf16.msra.mxu1 %v4214_v1  ;;  %2889 = vmatprep.subr.bf16.mxu0 %v4219_v3  ;;  %v2996_v1 = vld [vmem:[#allocation8 + $0x158] sm:$0xff]  ;;  %v2975_v3 = vld [vmem:[#allocation8 + $0xb0] sm:$0xff] }
 0x1ac   :  { %2930 = vmatprep.subr.bf16.mxu1 %v4222_v6  ;;  %v3011_v6 = vld [vmem:[#allocation8 + $0x1d0] sm:$0xff] }
 0x1ae   :  { %2890 = vmatpush2.bf16.msra.mxu0 %v4217_v7  ;;  %v2959_v7 = vld [vmem:[#allocation8 + $0x30] sm:$0xff] }
 0x1af   :  { %2931 = vmatpush2.bf16.msra.mxu1 %v4220_v5  ;;  %2891 = vmatprep.subr.bf16.mxu0 %v4225_v8  ;;  %v2995_v5 = vld [vmem:[#allocation8 + $0x150] sm:$0xff]  ;;  %v2974_v8 = vld [vmem:[#allocation8 + $0xa8] sm:$0xff] }
 0x1b0   :  { %2932 = vmatprep.subr.bf16.mxu1 %v4228_v9  ;;  %v3010_v9 = vld [vmem:[#allocation8 + $0x1c8] sm:$0xff] }
 0x1b2   :  { %2892 = vmatpush2.bf16.msra.mxu0 %v4223_v10  ;;  %v2958_v10 = vld [vmem:[#allocation8 + $0x28] sm:$0xff] }
 0x1b3   :  { %2933 = vmatpush2.bf16.msra.mxu1 %v4226_v11  ;;  %2893 = vmatprep.subr.bf16.mxu0 %v4231_v12  ;;  %v2994_v11 = vld [vmem:[#allocation8 + $0x148] sm:$0xff]  ;;  %v2973_v12 = vld [vmem:[#allocation8 + $0xa0] sm:$0xff] }
 0x1b4   :  { %2934 = vmatprep.subr.bf16.mxu1 %v4234_v13  ;;  %v3009_v13 = vld [vmem:[#allocation8 + $0x1c0] sm:$0xff] }
 0x1b6   :  { %2894 = vmatpush2.bf16.msra.mxu0 %v4229_v36  ;;  %v2957_v36 = vld [vmem:[#allocation8 + $0x20] sm:$0xff] }
 0x1b7   :  { %2935 = vmatpush2.bf16.msra.mxu1 %v4232_v37  ;;  %2895 = vmatprep.subr.bf16.mxu0 %v4237_v14  ;;  %v2993_v37 = vld [vmem:[#allocation8 + $0x140] sm:$0xff]  ;;  %v2972_v14 = vld [vmem:[#allocation8 + $0x98] sm:$0xff] }
 0x1b8   :  { %2936 = vmatprep.subr.bf16.mxu1 %v4240_v15  ;;  %v3008_v15 = vld [vmem:[#allocation8 + $0x1b8] sm:$0xff] }
 0x1ba   :  { %2896 = vmatpush2.bf16.msra.mxu0 %v4235_v18 }
 0x1bb   :  { %2937 = vmatpush2.bf16.msra.mxu1 %v4238_v19  ;;  %2897 = vmatprep.subr.bf16.mxu0 %v4243_v26  ;;  %v2956_v19 = vld [vmem:[#allocation8 + $0x18] sm:$0xff] }
 0x1bc   :  { %2938 = vmatprep.subr.bf16.mxu1 %v4246_v27  ;;  %v2992_v26 = vld [vmem:[#allocation8 + $0x138] sm:$0xff]  ;;  %v2971_v27 = vld [vmem:[#allocation8 + $0x90] sm:$0xff] }
 0x1be   :  { %2898 = vmatpush2.bf16.msra.mxu0 %v4241_v16  ;;  %v3007_v16 = vld [vmem:[#allocation8 + $0x1b0] sm:$0xff] }
 0x1bf   :  { %2939 = vmatpush2.bf16.msra.mxu1 %v4244_v17  ;;  %3579 = vmatprep.subr.mxu0 %v2984_v2  ;;  %v2955_v17 = vld [vmem:[#allocation8 + $0x10] sm:$0xff] }
 0x1c0   :  { %3614 = vmatprep.subr.mxu1 %v3016_v48  ;;  %v2991_v2 = vld [vmem:[#allocation8 + $0x130] sm:$0xff] }
 0x1c1   :  { %v4521_v32 = vpop.f32.mrf.mxu0  ;;  %2900 = vmatmul.mubr.bf16.vlgmr.msra.gmra.mxu0 %v4482_v34  ;;  %v2980_v34 = vld [vmem:[#allocation8 + $0xd8] sm:$0xff] }
 0x1c2   :  { %v4523_v33 = vpop.f32.mrf.mxu1  ;;  %2941 = vmatmul.mubr.bf16.vlgmr.msra.gmra.mxu1 %v4486_v35  ;;  %3580 = vmatpush3.msra.mxu0 %v2968_v30  ;;  %v2656_v18 = vadd.f32 %v4521_v32, %v4515_v28  ;;  %v3006_v30 = vld [vmem:[#allocation8 + $0x1a8] sm:$0xff] }
 0x1c3   :  { %v2657_v25 = vpop.f32.mrf.mxu0  ;;  %3581 = vmatprep.subr.mxu0 %v2983_v31  ;;  %3615 = vmatpush3.msra.mxu1 %v3000_v49  ;;  %v2954_v28 = vld [vmem:[#allocation8 + $0x8] sm:$0xff] }
 0x1c4   :  { %v2698_v4 = vpop.f32.mrf.mxu1  ;;  %v2658_v40 = vadd.f32 %v2657_v25, %v2617_v39  ;;  %3582 = vmatpush3.msra.mxu0 %v2967_v38  ;;  %3616 = vmatprep.subr.mxu1 %v3015_v53  ;;  %v2697_v31 = vadd.f32 %v4523_v33, %v2656_v18  ;;  %v2990_v32 = vld [vmem:[#allocation8 + $0x128] sm:$0xff]  ;;  %v2969_v38 = vld [vmem:[#allocation8 + $0x80] sm:$0xff]  ;;  %v485_v25 = vsub.s32 2, %v4492_v43  ;;  %v489_v33 = vsub.s32 3, %v4492_v43  ;;  %v3003_v43 = vld [vmem:[#allocation8 + $0x190] sm:$0xff] }
 0x1c5   :  { %v2659_v42 = vpop.f32.mrf.mxu0  ;;  %3583 = vmatprep.subr.mxu0 %v2982_v24  ;;  %3617 = vmatpush3.msra.mxu1 %v2999_v47  ;;  %v2953_v39 = vld [vmem:[#allocation8] sm:$0xff]  ;;  %v3002_v53 = vld [vmem:[#allocation8 + $0x188] sm:$0xff] }
 0x1c6   :  { %v2700_v22 = vpop.f32.mrf.mxu1  ;;  %v2699_v44 = vadd.f32 %v2698_v4, %v2658_v40  ;;  %3584 = vmatpush3.msra.mxu0 %v2966_v20  ;;  %3618 = vmatprep.subr.mxu1 %v3014_v55  ;;  %v2949_v24 = vmax.f32 %v2697_v31, 0.0  ;;  %v486_v4 = vrot.slane %v4494_v46, %v485_v25  ;;  %v490_v20 = vrot.slane %v4494_v46, %v489_v33  ;;  %v3005_v40 = vld [vmem:[#allocation8 + $0x1a0] sm:$0xff]  ;;  %v2987_v46 = vld [vmem:[#allocation8 + $0x110] sm:$0xff] }
 0x1c7   :  { %v2660_v35 = vpop.f32.mrf.mxu0  ;;  %3585 = vmatprep.subr.mxu0 %v2981_v41  ;;  %3619 = vmatpush3.msra.mxu1 %v2998_v57  ;;  %v2989_v22 = vld [vmem:[#allocation8 + $0x120] sm:$0xff] }
 0x1c8   :  { %v2701_v45 = vpop.f32.mrf.mxu1  ;;  %v2950_v50 = vmax.f32 %v2699_v44, 0.0  ;;  %3586 = vmatpush3.msra.mxu0 %v2965_v23  ;;  %3620 = vmatprep.subr.mxu1 %v3013_v59  ;;  %v3004_v44 = vld [vmem:[#allocation8 + $0x198] sm:$0xff]  ;;  %v3001_v55 = vld [vmem:[#allocation8 + $0x180] sm:$0xff] }
 0x1c9   :  { %3587 = vmatprep.subr.mxu0 %v2980_v34  ;;  %3621 = vmatpush3.msra.mxu1 %v2997_v61  ;;  %v2988_v45 = vld [vmem:[#allocation8 + $0x118] sm:$0xff] }
 0x1ca   :  { %3588 = vmatpush3.msra.mxu0 %v2964_v21  ;;  %3088 = vmatprep.mubr.f32.mxu0 %v2950_v50 }
 0x1cb   :  { %3589 = vmatprep.subr.mxu0 %v2979_v52  ;;  %3622 = vmatprep.subr.mxu1 %v3012_v63 }
 0x1cc   :  { %3590 = vmatpush3.msra.mxu0 %v2963_v54  ;;  %3623 = vmatpush3.msra.mxu1 %v2996_v1 }
 0x1cd   :  { %3591 = vmatprep.subr.mxu0 %v2978_v51  ;;  %3624 = vmatprep.subr.mxu1 %v3011_v6  ;;  %v2986_v51 = vld [vmem:[#allocation8 + $0x108] sm:$0xff] }
 0x1ce   :  { %3592 = vmatpush3.msra.mxu0 %v2962_v56  ;;  %3625 = vmatpush3.msra.mxu1 %v2995_v5  ;;  %v2985_v56 = vld [vmem:[#allocation8 + $0x100] sm:$0xff] }
 0x1cf   :  { %3593 = vmatprep.subr.mxu0 %v2977_v58  ;;  %3626 = vmatprep.subr.mxu1 %v3010_v9 }
 0x1d0   :  { %3594 = vmatpush3.msra.mxu0 %v2961_v60  ;;  %3627 = vmatpush3.msra.mxu1 %v2994_v11 }
 0x1d1   :  { %3595 = vmatprep.subr.mxu0 %v2976_v62  ;;  %3628 = vmatprep.subr.mxu1 %v3009_v13 }
 0x1d2   :  { %3596 = vmatpush3.msra.mxu0 %v2960_v0  ;;  %3629 = vmatpush3.msra.mxu1 %v2993_v37 }
 0x1d3   :  { %3597 = vmatprep.subr.mxu0 %v2975_v3  ;;  %3630 = vmatprep.subr.mxu1 %v3008_v15 }
 0x1d4   :  { %3598 = vmatpush3.msra.mxu0 %v2959_v7  ;;  %3631 = vmatpush3.msra.mxu1 %v2992_v26 }
 0x1d5   :  { %3599 = vmatprep.subr.mxu0 %v2974_v8  ;;  %3632 = vmatprep.subr.mxu1 %v3007_v16 }
 0x1d6   :  { %3600 = vmatpush3.msra.mxu0 %v2958_v10  ;;  %3633 = vmatpush3.msra.mxu1 %v2991_v2  ;;  %v3578_v2 = vld [vmem:[#allocation10] ss:$0 sm:$0xff] }
 0x1d7   :  { %3601 = vmatprep.subr.mxu0 %v2973_v12  ;;  %3634 = vmatprep.subr.mxu1 %v3006_v30 }
 0x1d8   :  { %3602 = vmatpush3.msra.mxu0 %v2957_v36  ;;  %3635 = vmatpush3.msra.mxu1 %v2990_v32 }
 0x1d9   :  { %3603 = vmatprep.subr.mxu0 %v2972_v14  ;;  %3636 = vmatprep.subr.mxu1 %v3005_v40 }
 0x1da   :  { %3604 = vmatpush3.msra.mxu0 %v2956_v19  ;;  %3637 = vmatpush3.msra.mxu1 %v2989_v22 }
 0x1db   :  { %3605 = vmatprep.subr.mxu0 %v2971_v27  ;;  %3638 = vmatprep.subr.mxu1 %v3004_v44 }
 0x1dc   :  { %3606 = vmatpush3.msra.mxu0 %v2955_v17  ;;  %3639 = vmatpush3.msra.mxu1 %v2988_v45 }
 0x1dd   :  { %3607 = vmatprep.subr.mxu0 %v2970_v29  ;;  %3640 = vmatprep.subr.mxu1 %v3003_v43 }
 0x1de   :  { %3608 = vmatpush3.msra.mxu0 %v2954_v28  ;;  %3641 = vmatpush3.msra.mxu1 %v2987_v46 }
 0x1df   :  { %3609 = vmatprep.subr.mxu0 %v2969_v38  ;;  %3642 = vmatprep.subr.mxu1 %v3002_v53 }
 0x1e0   :  { %3610 = vmatpush3.msra.mxu0 %v2953_v39  ;;  %3643 = vmatpush3.msra.mxu1 %v2986_v51 }
 0x1e1   :  { %3089 = vmatmul.mubr.f32.vlgmr.msra.gmra.mxu0 %v2949_v24  ;;  %3644 = vmatprep.subr.mxu1 %v3001_v55 }
 0x1e2   :  { %3645 = vmatpush3.msra.mxu1 %v2985_v56 }
 0x201   :  { %v2737_v41 = vpop.f32.mrf.mxu0 }
 0x202   :  { %v2778_v42 = vpop.f32.mrf.mxu1  ;;  %v2738_v23 = vadd.f32 %v2737_v41, %v486_v4 }
 0x203   :  { %v2739_v34 = vpop.f32.mrf.mxu0 }
 0x204   :  { %v2780_v35 = vpop.f32.mrf.mxu1  ;;  %v2779_v21 = vadd.f32 %v2778_v42, %v2738_v23  ;;  %v2740_v48 = vadd.f32 %v2739_v34, %v490_v20 }
 0x205   :  { %v2741_v49 = vpop.f32.mrf.mxu0 }
 0x206   :  { %v2782_v50 = vpop.f32.mrf.mxu1  ;;  %v2781_v52 = vadd.f32 %v2780_v35, %v2740_v48 }
 0x207   :  { %v2742_v54 = vpop.f32.mrf.mxu0 }
 0x208   :  { %v2783_v47 = vpop.f32.mrf.mxu1 }
 0x241   :  { %v2819_v57 = vpop.f32.mrf.mxu0 }
 0x242   :  { %v2860_v58 = vpop.f32.mrf.mxu1  ;;  %v2820_v59 = vadd.f32 %v2819_v57, %v2779_v21 }
 0x243   :  { %v2821_v60 = vpop.f32.mrf.mxu0 }
 0x244   :  { %v2862_v61 = vpop.f32.mrf.mxu1  ;;  %v2861_v62 = vadd.f32 %v2860_v58, %v2820_v59  ;;  %v2822_v6 = vadd.f32 %v2821_v60, %v2781_v52 }
 0x245   :  { %v2823_v63 = vpop.f32.mrf.mxu0 }
 0x246   :  { %v2864_v0 = vpop.f32.mrf.mxu1  ;;  %v2863_v8 = vadd.f32 %v2862_v61, %v2822_v6 }
 0x247   :  { %v2824_v1 = vpop.f32.mrf.mxu0 }
 0x248   :  { %v2865_v3 = vpop.f32.mrf.mxu1 }
 0x281   :  { %v2901_v7 = vpop.f32.mrf.mxu0 }
 0x282   :  { %v2942_v5 = vpop.f32.mrf.mxu1  ;;  %v2902_v9 = vadd.f32 %v2901_v7, %v2861_v62 }
 0x283   :  { %v2903_v10 = vpop.f32.mrf.mxu0 }
 0x284   :  { %v2944_v11 = vpop.f32.mrf.mxu1  ;;  %v2904_v12 = vadd.f32 %v2903_v10, %v2863_v8  ;;  %v2943_v13 = vadd.f32 %v2942_v5, %v2902_v9 }
 0x285   :  { %v2905_v36 = vpop.f32.mrf.mxu0 }
 0x286   :  { %v2946_v37 = vpop.f32.mrf.mxu1  ;;  %v2945_v14 = vadd.f32 %v2944_v11, %v2904_v12  ;;  %v2951_v26 = vmax.f32 %v2943_v13, 0.0 }
 0x287   :  { %v2906_v15 = vpop.f32.mrf.mxu0 }
 0x288   :  { %v2947_v18 = vpop.f32.mrf.mxu1  ;;  %v2952_v19 = vmax.f32 %v2945_v14, 0.0 }
 0x28a   :  { %3158 = vmatprep.mubr.f32.mxu1 %v2952_v19 }
 0x28b   :  { %3159 = vmatmul.mubr.f32.vlgmr.msra.gmra.mxu1 %v2951_v26 }
 0x2a1   :  { %v3611_v27 = vpop.f32.mrf.mxu0 }
 0x2a3   :  { %v3612_v16 = vpop.f32.mrf.mxu0 }
 0x2a4   :  { %v3613_v17 = vadd.f32 %v3612_v16, %v3611_v27 }
 0x2a6   :  { %v3091_v31 = vadd.f32 %v3613_v17, %v3578_v2 }
 0x34b   :  { %v3646_v29 = vpop.f32.mrf.mxu1 }
 0x34d   :  { %v3647_v30 = vpop.f32.mrf.mxu1 }
 0x34e   :  { %v3648_v28 = vadd.f32 %v3647_v30, %v3646_v29 }
 0x350   :  { %v3161_v32 = vadd.f32 %v3648_v28, %v3091_v31 }
 0x352   :  { %3164 = vst [vmem:[#allocation11] sm:$0xff] %v3161_v32 }
 0x353   :  { %4358 = shalt.err (!%p4355_p1)
}
 0x354   :  { %3174 = dma.vmem_to_hbm [thread:$0]  %s3172_s4, 128, %s4543_s5, [#allocation4]  }
 0x355   :  { %4373 = dma.done.wait [#allocation4], 128  }
 0x356   :  { %4374 = vsyncadd [#allocation4], 4294967168 }
 0x357   :  { %3178 = vsyncpa [#allocation3], 1 }
 0x358   :  { %3179 = vsyncpa [#allocation6], 1 }
 0x359   :  { %3180 = vsyncpa [#allocation9], 1 }
 0x35a   :  { %3181 = vsyncpa [#allocation4], 1 }

</bundles_post_ra>
